<compile_context>
chip_gen: v7x
topology: tpu7x:2x2x1
jax: 0.10.0
libtpu: 0.0.40
codegen_flags: <defaults>
</compile_context>

<pallas_src>
import functools

import jax
import jax.numpy as jnp
from jax import lax
from jax.experimental import pallas as pl
from jax.experimental.pallas import tpu as pltpu


_VMEM_LIMIT = 32 * 1024 * 1024   # v7x-safe; raise to 64-96 MiB on v5e/v6e at real sizes
_TN_MAX = 256                    # Cout tile; set to 128 on v5e (128x128 MXU, 1 vst slot)


def _stable_sigmoid(x):
    z = jnp.exp(-jnp.abs(x))
    return jnp.where(x >= 0.0, 1.0 / (1.0 + z), z / (1.0 + z))


def _leaky_relu(x):
    return jnp.where(x >= 0.0, x, 0.2 * x)


# ----------------------------------------------------------------------------
# Pallas kernels
# ----------------------------------------------------------------------------
def _conv3x3_kernel(x_ref, w_ref, b_ref, o_ref, *, ho, wo, stride, hp2):
    """3x3 conv (pad=1, stride s) + bias + LeakyReLU(0.2).

    One image / one Cout tile per grid step.  x_ref holds the zero-padded,
    phase-decomposed input (s*s phase sub-grids stacked along the row axis),
    so every tap window is a contiguous static slice; the 9 taps are a static
    in-kernel loop of accumulating MXU matmuls with M = ho*wo, accumulating
    in a local f32 value (back-to-back dots -> MRB-friendly on v7x).
    """
    cin = x_ref.shape[-1]
    tn = w_ref.shape[-1]
    m = ho * wo
    xv = x_ref[...]                                  # (1, s*s*hp2, wp2, cin)
    acc = jnp.zeros((m, tn), jnp.float32)
    for t in range(9):
        dy, dx = t // 3, t % 3
        ph = (dy % stride) * stride + (dx % stride)
        r0 = ph * hp2 + dy // stride
        c0 = dx // stride
        win = xv[0, r0:r0 + ho, c0:c0 + wo, :]       # (ho, wo, cin), static slice
        acc = acc + jnp.dot(win.reshape(m, cin), w_ref[t],
                            preferred_element_type=jnp.float32)
    y = _leaky_relu(acc + b_ref[...])                # (m, tn) f32
    # NOTE: for the cout=64 layers tn=64 (<128) forces masked stores; at real
    # resolutions consider a lane-dense (ho, wo*cout) output layout.
    o_ref[...] = y.reshape(o_ref.shape).astype(o_ref.dtype)


def _tail_kernel(x_ref, w8_ref, b8_ref, w9_ref, b9_ref, w10_ref, b10_ref,
                 o_ref, *, ho, wo, stride, hp2):
    """Fused tail: Conv3x3(512->512, s=2) + LReLU + AdaptiveAvgPool2d(1)
    + Conv1x1(512->1024) + LReLU + Conv1x1(1024->1) + Sigmoid.

    The whole batch is processed in one grid step, so the conv matmuls have
    M = batch*ho*wo and the head matmul has M = batch.
    """
    n = x_ref.shape[0]
    cin = x_ref.shape[-1]
    cout = w8_ref.shape[-1]
    m = ho * wo
    xv = x_ref[...]                                  # (n, s*s*hp2, wp2, cin)
    acc = jnp.zeros((n * m, cout), jnp.float32)
    for t in range(9):
        dy, dx = t // 3, t % 3
        ph = (dy % stride) * stride + (dx % stride)
        r0 = ph * hp2 + dy // stride
        c0 = dx // stride
        win = xv[:, r0:r0 + ho, c0:c0 + wo, :]       # (n, ho, wo, cin)
        acc = acc + jnp.dot(win.reshape(n * m, cin), w8_ref[t],
                            preferred_element_type=jnp.float32)
    y = _leaky_relu(acc + b8_ref[...])               # (n*m, cout) f32
    pooled = jnp.mean(y.reshape(n, m, cout), axis=1)          # AdaptiveAvgPool2d(1)
    feat = jnp.dot(pooled.astype(jnp.bfloat16), w9_ref[...],
                   preferred_element_type=jnp.float32) + b9_ref[...]
    feat = _leaky_relu(feat)                         # (n, 1024)
    # 1024 -> 1 decision conv as VPU multiply + lane reduction (no width-1 MXU dot)
    logit = jnp.sum(feat * w10_ref[...], axis=-1, keepdims=True) + b10_ref[...]
    o_ref[...] = _stable_sigmoid(logit).astype(o_ref.dtype)


# ----------------------------------------------------------------------------
# Wrappers
# ----------------------------------------------------------------------------
def _prep_input(x_nhwc, stride):
    """Zero-pad (pad=1) and, for stride>1, re-lay out the padded image as
    stride*stride phase sub-grids stacked along the row axis so the conv
    kernel only needs contiguous static slices (no strided loads)."""
    n, h, w, c = x_nhwc.shape
    xp = jnp.pad(x_nhwc, ((0, 0), (1, 1), (1, 1), (0, 0)))
    hp, wp = h + 2, w + 2
    if stride == 1:
        return xp, hp, wp
    s = stride
    hp_up = -(-hp // s) * s
    wp_up = -(-wp // s) * s
    if (hp_up, wp_up) != (hp, wp):
        xp = jnp.pad(xp, ((0, 0), (0, hp_up - hp), (0, wp_up - wp), (0, 0)))
    hp2, wp2 = hp_up // s, wp_up // s
    xr = xp.reshape(n, hp2, s, wp2, s, c)
    xr = jnp.transpose(xr, (0, 2, 4, 1, 3, 5))        # (n, s, s, hp2, wp2, c)
    return xr.reshape(n, s * s * hp2, wp2, c), hp2, wp2


def conv3x3_lrelu(x_nhwc, w_taps, b, stride):
    """x: (N,H,W,Cin) bf16; w_taps: (9,Cin,Cout) bf16; b: (1,Cout) f32."""
    n, h, w, cin = x_nhwc.shape
    cout = w_taps.shape[-1]
    ho = (h + 2 - 3) // stride + 1
    wo = (w + 2 - 3) // stride + 1
    m = ho * wo

    if cin % 8 != 0:                                  # first layer: pad Cin 3 -> 8
        pad_c = 8 - cin % 8
        x_nhwc = jnp.pad(x_nhwc, ((0, 0), (0, 0), (0, 0), (0, pad_c)))
        w_taps = jnp.pad(w_taps, ((0, 0), (0, pad_c), (0, 0)))
        cin += pad_c

    xprep, hp2, wp2 = _prep_input(x_nhwc, stride)
    rows = xprep.shape[1]                             # stride*stride*hp2

    tn = cout if cout <= _TN_MAX else _TN_MAX
    nj = cout // tn

    flops = 2 * n * m * 9 * cin * cout
    bytes_accessed = (xprep.size * 2 + w_taps.size * 2 + b.size * 4
                      + n * m * cout * 2)

    kernel = functools.partial(_conv3x3_kernel, ho=ho, wo=wo, stride=stride,
                               hp2=hp2)
    out = pl.pallas_call(
        kernel,
        out_shape=jax.ShapeDtypeStruct((n, m, cout), jnp.bfloat16),
        grid=(n, nj),
        in_specs=[
            # padded (phase-decomposed) activation: constant in j -> one DMA per image
            pl.BlockSpec((1, rows, wp2, cin), lambda bb, j: (bb, 0, 0, 0)),
            # all 9 taps in one weight block
            pl.BlockSpec((9, cin, tn), lambda bb, j: (0, 0, j)),
            pl.BlockSpec((1, tn), lambda bb, j: (0, j)),
        ],
        out_specs=pl.BlockSpec((1, m, tn), lambda bb, j: (bb, 0, j)),
        compiler_params=pltpu.CompilerParams(
            dimension_semantics=("parallel", "parallel"),
            vmem_limit_bytes=_VMEM_LIMIT),
        cost_estimate=pl.CostEstimate(flops=flops, transcendentals=0,
                                      bytes_accessed=bytes_accessed),
    )(xprep, w_taps, b)
    return out.reshape(n, ho, wo, cout)


def conv_tail(x_nhwc, w8, b8, stride, w9, b9, w10, b10):
    """Fused: last conv (3x3, stride 2) + LReLU + avgpool + 1x1 conv(512->1024)
    + LReLU + 1x1 conv(1024->1) + Flatten + Sigmoid."""
    n, h, w, cin = x_nhwc.shape
    cout = w8.shape[-1]
    cmid = w9.shape[-1]
    ho = (h + 2 - 3) // stride + 1
    wo = (w + 2 - 3) // stride + 1
    m = ho * wo

    xprep, hp2, wp2 = _prep_input(x_nhwc, stride)
    rows = xprep.shape[1]
    w10t = w10.reshape(1, cmid)          # lane-dense (1, 1024) for the VPU reduction

    flops = (2 * n * m * 9 * cin * cout + 2 * n * cout * cmid + 2 * n * cmid)
    bytes_accessed = (xprep.size * 2 + w8.size * 2 + w9.size * 2 + w10t.size * 2
                      + (b8.size + b9.size + b10.size) * 4 + n * 4)

    kernel = functools.partial(_tail_kernel, ho=ho, wo=wo, stride=stride,
                               hp2=hp2)
    return pl.pallas_call(
        kernel,
        out_shape=jax.ShapeDtypeStruct((n, 1), jnp.float32),
        grid=(1,),
        in_specs=[
            pl.BlockSpec((n, rows, wp2, cin), lambda i: (0, 0, 0, 0)),
            pl.BlockSpec((9, cin, cout), lambda i: (0, 0, 0)),
            pl.BlockSpec((1, cout), lambda i: (0, 0)),
            pl.BlockSpec((cout, cmid), lambda i: (0, 0)),
            pl.BlockSpec((1, cmid), lambda i: (0, 0)),
            pl.BlockSpec((1, cmid), lambda i: (0, 0)),
            pl.BlockSpec((1, 1), lambda i: (0, 0)),
        ],
        out_specs=pl.BlockSpec((n, 1), lambda i: (0, 0)),
        compiler_params=pltpu.CompilerParams(
            dimension_semantics=("arbitrary",),
            vmem_limit_bytes=_VMEM_LIMIT),
        cost_estimate=pl.CostEstimate(flops=flops, transcendentals=0,
                                      bytes_accessed=bytes_accessed),
    )(xprep, w8, b8, w9, b9, w10t, b10)


# ----------------------------------------------------------------------------
# Parameter construction (deterministic, synthetic)
# ----------------------------------------------------------------------------
def spectral_normalize(w2d, iters=30):
    """Divide a 2D weight matrix by (an estimate of) its largest singular value."""
    v = jnp.ones((w2d.shape[1],), jnp.float32)
    v = v / jnp.linalg.norm(v)
    u = None
    for _ in range(iters):
        u = w2d @ v
        u = u / (jnp.linalg.norm(u) + 1e-12)
        v = w2d.T @ u
        v = v / (jnp.linalg.norm(v) + 1e-12)
    sigma = u @ (w2d @ v)
    return w2d / (sigma + 1e-12)


# (cin, cout, stride, spectral_norm) for the 3x3 conv stack
CONV_CFG = [
    (3, 64, 1, False),
    (64, 64, 2, True),
    (64, 128, 1, True),
    (128, 128, 2, True),
    (128, 256, 1, True),
    (256, 256, 2, True),
    (256, 512, 1, True),
    (512, 512, 2, True),
]


def init_params(key):
    params = {"convs": []}
    keys = jax.random.split(key, 2 * len(CONV_CFG) + 4)
    ki = 0
    for cin, cout, stride, use_sn in CONV_CFG:
        w = 0.05 * jax.random.normal(keys[ki], (3, 3, cin, cout), jnp.float32)
        ki += 1
        b = 0.01 * jax.random.normal(keys[ki], (1, cout), jnp.float32)
        ki += 1
        w2d = w.reshape(9 * cin, cout)
        if use_sn:
            w2d = spectral_normalize(w2d)
        params["convs"].append((w2d.reshape(9, cin, cout), b, stride))
    # spectral_norm(Conv2d(512, 1024, kernel_size=1))
    w9 = 0.05 * jax.random.normal(keys[ki], (512, 1024), jnp.float32)
    ki += 1
    b9 = 0.01 * jax.random.normal(keys[ki], (1, 1024), jnp.float32)
    ki += 1
    params["head1"] = (spectral_normalize(w9), b9)
    # Conv2d(1024, 1, kernel_size=1) -- no spectral norm
    w10 = 0.05 * jax.random.normal(keys[ki], (1024, 1), jnp.float32)
    ki += 1
    b10 = 0.01 * jax.random.normal(keys[ki], (1, 1), jnp.float32)
    params["head2"] = (w10, b10)
    return params


# ----------------------------------------------------------------------------
# Forward pass (Pallas) and pure-JAX reference
# ----------------------------------------------------------------------------
def srgan_discriminator_forward(x_nchw, params):
    # NCHW (PyTorch) -> NHWC; bf16 activations between layers.
    x = jnp.transpose(x_nchw, (0, 2, 3, 1)).astype(jnp.bfloat16)
    convs = params["convs"]
    for w_taps, b, stride in convs[:-1]:
        x = conv3x3_lrelu(x, w_taps.astype(jnp.bfloat16), b, stride)
    w8, b8, s8 = convs[-1]
    w9, b9 = params["head1"]
    w10, b10 = params["head2"]
    disc = conv_tail(x, w8.astype(jnp.bfloat16), b8, s8,
                     w9.astype(jnp.bfloat16), b9,
                     w10.astype(jnp.bfloat16), b10)
    return {"discriminated": disc}


def srgan_discriminator_reference(x_nchw, params):
    """Pure-JAX f32 reference of the same forward pass (for validation)."""
    x = jnp.transpose(x_nchw, (0, 2, 3, 1)).astype(jnp.float32)
    for w_taps, b, stride in params["convs"]:
        cin, cout = w_taps.shape[1], w_taps.shape[2]
        w_hwio = w_taps.reshape(3, 3, cin, cout)
        y = lax.conv_general_dilated(
            x, w_hwio, window_strides=(stride, stride),
            padding=((1, 1), (1, 1)),
            dimension_numbers=("NHWC", "HWIO", "NHWC"))
        y = y + b.reshape(1, 1, 1, cout)
        x = jnp.where(y >= 0.0, y, 0.2 * y)
    pooled = jnp.mean(x, axis=(1, 2))
    w9, b9 = params["head1"]
    feat = pooled @ w9 + b9
    feat = jnp.where(feat >= 0.0, feat, 0.2 * feat)
    w10, b10 = params["head2"]
    logit = feat @ w10 + b10
    return jax.nn.sigmoid(logit)


# ----------------------------------------------------------------------------
if __name__ == "__main__":
    root = jax.random.PRNGKey(0)
    k_params, k_input = jax.random.split(root)

    params = init_params(k_params)

    # shape_targets = (3, 16, 16); batch = 2; PyTorch-style NCHW input.
    x = jax.random.normal(k_input, (2, 3, 16, 16), jnp.float32)

    out = srgan_discriminator_forward(x, params)
    disc = jax.block_until_ready(out["discriminated"])

    assert disc.shape == (2, 1)
    assert disc.dtype == jnp.float32
    assert bool(jnp.all(jnp.isfinite(disc)))
    assert bool(jnp.all((disc >= 0.0) & (disc <= 1.0)))

    ref = srgan_discriminator_reference(x, params)
    assert bool(jnp.allclose(disc, ref, atol=3e-2)), (disc, ref)

    print("KERNEL_OK")
</pallas_src>

<mosaic_0001>
module attributes {stable_mosaic.version = 11 : i64} {
  func.func @_conv3x3_kernel(%arg0: i32, %arg1: i32, %arg2: memref<1x18x18x8xbf16, #tpu.memory_space<vmem>>, %arg3: memref<9x8x64xbf16, #tpu.memory_space<vmem>>, %arg4: memref<1x64xf32, #tpu.memory_space<vmem>>, %arg5: memref<1x256x64xbf16, #tpu.memory_space<vmem>>) attributes {dimension_semantics = [#tpu.dimension_semantics<parallel>, #tpu.dimension_semantics<parallel>], iteration_bounds = array<i64: 2, 1>, scalar_prefetch = 0 : i64, scratch_operands = 0 : i64, tpu.core_type = #tpu.core_type<tc>, window_params = [{transform_indices = @transform_0, window_bounds = array<i64: 1, 18, 18, 8>}, {transform_indices = @transform_1, window_bounds = array<i64: 9, 8, 64>}, {transform_indices = @transform_2, window_bounds = array<i64: 1, 64>}, {transform_indices = @transform_3, window_bounds = array<i64: 1, 256, 64>}]} {
    %c0 = arith.constant 0 : index
    %c0_0 = arith.constant 0 : index
    %c0_1 = arith.constant 0 : index
    %c0_2 = arith.constant 0 : index
    %0 = vector.load %arg2[%c0, %c0_0, %c0_1, %c0_2] : memref<1x18x18x8xbf16, #tpu.memory_space<vmem>>, vector<1x18x18x8xbf16>
    %cst = arith.constant 0.000000e+00 : f32
    %1 = vector.broadcast %cst : f32 to vector<256x64xf32>
    %2 = vector.extract_strided_slice %0 {offsets = [0, 0, 0, 0], sizes = [1, 16, 16, 8], strides = [1, 1, 1, 1]} : vector<1x18x18x8xbf16> to vector<1x16x16x8xbf16>
    %3 = vector.shape_cast %2 : vector<1x16x16x8xbf16> to vector<16x16x8xbf16>
    %4 = vector.shape_cast %3 : vector<16x16x8xbf16> to vector<256x8xbf16>
    %c0_3 = arith.constant 0 : index
    %c0_4 = arith.constant 0 : index
    %c0_5 = arith.constant 0 : index
    %5 = vector.load %arg3[%c0_3, %c0_4, %c0_5] : memref<9x8x64xbf16, #tpu.memory_space<vmem>>, vector<1x8x64xbf16>
    %6 = vector.shape_cast %5 : vector<1x8x64xbf16> to vector<8x64xbf16>
    %cst_6 = arith.constant dense<0.000000e+00> : vector<256x64xf32>
    %7 = tpu.matmul %4, %6, %cst_6 {dimension_numbers = #tpu.dot_dimension_numbers<[1], [0], [0], [1], [0, 0, 1, 1], [], []>} : vector<256x8xbf16>, vector<8x64xbf16>, vector<256x64xf32> -> vector<256x64xf32>
    %8 = arith.addf %1, %7 : vector<256x64xf32>
    %9 = vector.extract_strided_slice %0 {offsets = [0, 0, 1, 0], sizes = [1, 16, 16, 8], strides = [1, 1, 1, 1]} : vector<1x18x18x8xbf16> to vector<1x16x16x8xbf16>
    %10 = vector.shape_cast %9 : vector<1x16x16x8xbf16> to vector<16x16x8xbf16>
    %11 = vector.shape_cast %10 : vector<16x16x8xbf16> to vector<256x8xbf16>
    %c1 = arith.constant 1 : index
    %c0_7 = arith.constant 0 : index
    %c0_8 = arith.constant 0 : index
    %12 = vector.load %arg3[%c1, %c0_7, %c0_8] : memref<9x8x64xbf16, #tpu.memory_space<vmem>>, vector<1x8x64xbf16>
    %13 = vector.shape_cast %12 : vector<1x8x64xbf16> to vector<8x64xbf16>
    %cst_9 = arith.constant dense<0.000000e+00> : vector<256x64xf32>
    %14 = tpu.matmul %11, %13, %cst_9 {dimension_numbers = #tpu.dot_dimension_numbers<[1], [0], [0], [1], [0, 0, 1, 1], [], []>} : vector<256x8xbf16>, vector<8x64xbf16>, vector<256x64xf32> -> vector<256x64xf32>
    %15 = arith.addf %8, %14 : vector<256x64xf32>
    %16 = vector.extract_strided_slice %0 {offsets = [0, 0, 2, 0], sizes = [1, 16, 16, 8], strides = [1, 1, 1, 1]} : vector<1x18x18x8xbf16> to vector<1x16x16x8xbf16>
    %17 = vector.shape_cast %16 : vector<1x16x16x8xbf16> to vector<16x16x8xbf16>
    %18 = vector.shape_cast %17 : vector<16x16x8xbf16> to vector<256x8xbf16>
    %c2 = arith.constant 2 : index
    %c0_10 = arith.constant 0 : index
    %c0_11 = arith.constant 0 : index
    %19 = vector.load %arg3[%c2, %c0_10, %c0_11] : memref<9x8x64xbf16, #tpu.memory_space<vmem>>, vector<1x8x64xbf16>
    %20 = vector.shape_cast %19 : vector<1x8x64xbf16> to vector<8x64xbf16>
    %cst_12 = arith.constant dense<0.000000e+00> : vector<256x64xf32>
    %21 = tpu.matmul %18, %20, %cst_12 {dimension_numbers = #tpu.dot_dimension_numbers<[1], [0], [0], [1], [0, 0, 1, 1], [], []>} : vector<256x8xbf16>, vector<8x64xbf16>, vector<256x64xf32> -> vector<256x64xf32>
    %22 = arith.addf %15, %21 : vector<256x64xf32>
    %23 = vector.extract_strided_slice %0 {offsets = [0, 1, 0, 0], sizes = [1, 16, 16, 8], strides = [1, 1, 1, 1]} : vector<1x18x18x8xbf16> to vector<1x16x16x8xbf16>
    %24 = vector.shape_cast %23 : vector<1x16x16x8xbf16> to vector<16x16x8xbf16>
    %25 = vector.shape_cast %24 : vector<16x16x8xbf16> to vector<256x8xbf16>
    %c3 = arith.constant 3 : index
    %c0_13 = arith.constant 0 : index
    %c0_14 = arith.constant 0 : index
    %26 = vector.load %arg3[%c3, %c0_13, %c0_14] : memref<9x8x64xbf16, #tpu.memory_space<vmem>>, vector<1x8x64xbf16>
    %27 = vector.shape_cast %26 : vector<1x8x64xbf16> to vector<8x64xbf16>
    %cst_15 = arith.constant dense<0.000000e+00> : vector<256x64xf32>
    %28 = tpu.matmul %25, %27, %cst_15 {dimension_numbers = #tpu.dot_dimension_numbers<[1], [0], [0], [1], [0, 0, 1, 1], [], []>} : vector<256x8xbf16>, vector<8x64xbf16>, vector<256x64xf32> -> vector<256x64xf32>
    %29 = arith.addf %22, %28 : vector<256x64xf32>
    %30 = vector.extract_strided_slice %0 {offsets = [0, 1, 1, 0], sizes = [1, 16, 16, 8], strides = [1, 1, 1, 1]} : vector<1x18x18x8xbf16> to vector<1x16x16x8xbf16>
    %31 = vector.shape_cast %30 : vector<1x16x16x8xbf16> to vector<16x16x8xbf16>
    %32 = vector.shape_cast %31 : vector<16x16x8xbf16> to vector<256x8xbf16>
    %c4 = arith.constant 4 : index
    %c0_16 = arith.constant 0 : index
    %c0_17 = arith.constant 0 : index
    %33 = vector.load %arg3[%c4, %c0_16, %c0_17] : memref<9x8x64xbf16, #tpu.memory_space<vmem>>, vector<1x8x64xbf16>
    %34 = vector.shape_cast %33 : vector<1x8x64xbf16> to vector<8x64xbf16>
    %cst_18 = arith.constant dense<0.000000e+00> : vector<256x64xf32>
    %35 = tpu.matmul %32, %34, %cst_18 {dimension_numbers = #tpu.dot_dimension_numbers<[1], [0], [0], [1], [0, 0, 1, 1], [], []>} : vector<256x8xbf16>, vector<8x64xbf16>, vector<256x64xf32> -> vector<256x64xf32>
    %36 = arith.addf %29, %35 : vector<256x64xf32>
    %37 = vector.extract_strided_slice %0 {offsets = [0, 1, 2, 0], sizes = [1, 16, 16, 8], strides = [1, 1, 1, 1]} : vector<1x18x18x8xbf16> to vector<1x16x16x8xbf16>
    %38 = vector.shape_cast %37 : vector<1x16x16x8xbf16> to vector<16x16x8xbf16>
    %39 = vector.shape_cast %38 : vector<16x16x8xbf16> to vector<256x8xbf16>
    %c5 = arith.constant 5 : index
    %c0_19 = arith.constant 0 : index
    %c0_20 = arith.constant 0 : index
    %40 = vector.load %arg3[%c5, %c0_19, %c0_20] : memref<9x8x64xbf16, #tpu.memory_space<vmem>>, vector<1x8x64xbf16>
    %41 = vector.shape_cast %40 : vector<1x8x64xbf16> to vector<8x64xbf16>
    %cst_21 = arith.constant dense<0.000000e+00> : vector<256x64xf32>
    %42 = tpu.matmul %39, %41, %cst_21 {dimension_numbers = #tpu.dot_dimension_numbers<[1], [0], [0], [1], [0, 0, 1, 1], [], []>} : vector<256x8xbf16>, vector<8x64xbf16>, vector<256x64xf32> -> vector<256x64xf32>
    %43 = arith.addf %36, %42 : vector<256x64xf32>
    %44 = vector.extract_strided_slice %0 {offsets = [0, 2, 0, 0], sizes = [1, 16, 16, 8], strides = [1, 1, 1, 1]} : vector<1x18x18x8xbf16> to vector<1x16x16x8xbf16>
    %45 = vector.shape_cast %44 : vector<1x16x16x8xbf16> to vector<16x16x8xbf16>
    %46 = vector.shape_cast %45 : vector<16x16x8xbf16> to vector<256x8xbf16>
    %c6 = arith.constant 6 : index
    %c0_22 = arith.constant 0 : index
    %c0_23 = arith.constant 0 : index
    %47 = vector.load %arg3[%c6, %c0_22, %c0_23] : memref<9x8x64xbf16, #tpu.memory_space<vmem>>, vector<1x8x64xbf16>
    %48 = vector.shape_cast %47 : vector<1x8x64xbf16> to vector<8x64xbf16>
    %cst_24 = arith.constant dense<0.000000e+00> : vector<256x64xf32>
    %49 = tpu.matmul %46, %48, %cst_24 {dimension_numbers = #tpu.dot_dimension_numbers<[1], [0], [0], [1], [0, 0, 1, 1], [], []>} : vector<256x8xbf16>, vector<8x64xbf16>, vector<256x64xf32> -> vector<256x64xf32>
    %50 = arith.addf %43, %49 : vector<256x64xf32>
    %51 = vector.extract_strided_slice %0 {offsets = [0, 2, 1, 0], sizes = [1, 16, 16, 8], strides = [1, 1, 1, 1]} : vector<1x18x18x8xbf16> to vector<1x16x16x8xbf16>
    %52 = vector.shape_cast %51 : vector<1x16x16x8xbf16> to vector<16x16x8xbf16>
    %53 = vector.shape_cast %52 : vector<16x16x8xbf16> to vector<256x8xbf16>
    %c7 = arith.constant 7 : index
    %c0_25 = arith.constant 0 : index
    %c0_26 = arith.constant 0 : index
    %54 = vector.load %arg3[%c7, %c0_25, %c0_26] : memref<9x8x64xbf16, #tpu.memory_space<vmem>>, vector<1x8x64xbf16>
    %55 = vector.shape_cast %54 : vector<1x8x64xbf16> to vector<8x64xbf16>
    %cst_27 = arith.constant dense<0.000000e+00> : vector<256x64xf32>
    %56 = tpu.matmul %53, %55, %cst_27 {dimension_numbers = #tpu.dot_dimension_numbers<[1], [0], [0], [1], [0, 0, 1, 1], [], []>} : vector<256x8xbf16>, vector<8x64xbf16>, vector<256x64xf32> -> vector<256x64xf32>
    %57 = arith.addf %50, %56 : vector<256x64xf32>
    %58 = vector.extract_strided_slice %0 {offsets = [0, 2, 2, 0], sizes = [1, 16, 16, 8], strides = [1, 1, 1, 1]} : vector<1x18x18x8xbf16> to vector<1x16x16x8xbf16>
    %59 = vector.shape_cast %58 : vector<1x16x16x8xbf16> to vector<16x16x8xbf16>
    %60 = vector.shape_cast %59 : vector<16x16x8xbf16> to vector<256x8xbf16>
    %c8 = arith.constant 8 : index
    %c0_28 = arith.constant 0 : index
    %c0_29 = arith.constant 0 : index
    %61 = vector.load %arg3[%c8, %c0_28, %c0_29] : memref<9x8x64xbf16, #tpu.memory_space<vmem>>, vector<1x8x64xbf16>
    %62 = vector.shape_cast %61 : vector<1x8x64xbf16> to vector<8x64xbf16>
    %cst_30 = arith.constant dense<0.000000e+00> : vector<256x64xf32>
    %63 = tpu.matmul %60, %62, %cst_30 {dimension_numbers = #tpu.dot_dimension_numbers<[1], [0], [0], [1], [0, 0, 1, 1], [], []>} : vector<256x8xbf16>, vector<8x64xbf16>, vector<256x64xf32> -> vector<256x64xf32>
    %64 = arith.addf %57, %63 : vector<256x64xf32>
    %c0_31 = arith.constant 0 : index
    %c0_32 = arith.constant 0 : index
    %65 = vector.load %arg4[%c0_31, %c0_32] : memref<1x64xf32, #tpu.memory_space<vmem>>, vector<1x64xf32>
    %66 = vector.broadcast %65 : vector<1x64xf32> to vector<256x64xf32>
    %67 = arith.addf %64, %66 : vector<256x64xf32>
    %cst_33 = arith.constant 0.000000e+00 : f32
    %68 = vector.broadcast %cst_33 : f32 to vector<256x64xf32>
    %69 = arith.cmpf oge, %67, %68 : vector<256x64xf32>
    %cst_34 = arith.constant 2.000000e-01 : f32
    %70 = vector.broadcast %cst_34 : f32 to vector<256x64xf32>
    %71 = arith.mulf %70, %67 : vector<256x64xf32>
    %72 = arith.select %69, %67, %71 : vector<256x64xi1>, vector<256x64xf32>
    %73 = vector.shape_cast %72 : vector<256x64xf32> to vector<1x256x64xf32>
    %74 = arith.truncf %73 : vector<1x256x64xf32> to vector<1x256x64xbf16>
    %c0_35 = arith.constant 0 : index
    %c0_36 = arith.constant 0 : index
    %c0_37 = arith.constant 0 : index
    %75 = vector.load %arg5[%c0_35, %c0_36, %c0_37] : memref<1x256x64xbf16, #tpu.memory_space<vmem>>, vector<1x256x64xbf16>
    tpu.vector_store %arg5[%c0_35, %c0_36, %c0_37], %74 {strides = array<i32>} : memref<1x256x64xbf16, #tpu.memory_space<vmem>>, vector<1x256x64xbf16>,
    return
  }
  func.func @transform_0(%arg0: i32, %arg1: i32) -> (i32, i32, i32, i32) {
    %c0_i32 = arith.constant 0 : i32
    %c0_i32_0 = arith.constant 0 : i32
    %c0_i32_1 = arith.constant 0 : i32
    %c0_i32_2 = arith.constant 0 : i32
    return %arg0, %c0_i32, %c0_i32_0, %c0_i32_1 : i32, i32, i32, i32
  }
  func.func @transform_1(%arg0: i32, %arg1: i32) -> (i32, i32, i32) {
    %c0_i32 = arith.constant 0 : i32
    %c0_i32_0 = arith.constant 0 : i32
    %c0_i32_1 = arith.constant 0 : i32
    return %c0_i32, %c0_i32_0, %arg1 : i32, i32, i32
  }
  func.func @transform_2(%arg0: i32, %arg1: i32) -> (i32, i32) {
    %c0_i32 = arith.constant 0 : i32
    %c0_i32_0 = arith.constant 0 : i32
    return %c0_i32, %arg1 : i32, i32
  }
  func.func @transform_3(%arg0: i32, %arg1: i32) -> (i32, i32, i32) {
    %c0_i32 = arith.constant 0 : i32
    %c0_i32_0 = arith.constant 0 : i32
    return %arg0, %c0_i32, %arg1 : i32, i32, i32
  }
}

</mosaic_0001>

<bundles_post_ra>
// kernel: tpu_custom_call.1
= control target key start
LH: loop header
LB: loop body
LE: loop exit
PB: predicated region body
PF: predicated region fallthrough
CT: control target
= control target key end

     0   :  { %s4459_s12 = smov 0   ;;  %s4461_s13 = smov 0   ;;  %s5572_s0 = inlined_call_operand.vmem [shape: bf16[2,18,18,8], index: 0, kind: input, shape index: {}]   ;;  %s5573_s1 = inlined_call_operand.vmem [shape: bf16[9,8,64], index: 1, kind: input, shape index: {}]   ;;  %s5574_s2 = inlined_call_operand.vmem [shape: f32[1,64], index: 2, kind: input, shape index: {}]   ;;  %s5575_s3 = inlined_call_operand.vmem [shape: bf16[2,256,64], index: 3, kind: output, shape index: {}]  }
   0x1   :  { %s4463_s14 = smov 0  }
   0x2 LB: > { %s25_s15 = sadd.s32 1, %s4433_s13  ;;  %p3345_p0 = scmp.ge.s32.totalorder %s4437_s14, 1  ;;  %s4437_s14 = sphi %s4463_s14, %s13_s14   ;;  %s4433_s13 = sphi %s4461_s13, %s5654_s13   ;;  %s4429_s12 = sphi %s4459_s12, %s5653_s12  }
   0x3   : > { %p27_p1 = scmp.ge.s32.totalorder %s25_s15, 2  ;;  %p168_p2 = scmp.lt.s32.totalorder %s4437_s14, 3 }
   0x5   : > { %s5656_s15 = smov (%p27_p1, %s25_s15), 0  ;;  %p169_p3 = pnand %p3345_p0, %p168_p2 }
   0x7   : > { %172 = sbr.rel (%p169_p3) target bundleno = 557 (0x22d), region = 32 }
   0xe   : > { %v3349_v0 = vld [vmem:[%s5573_s1 + $0x4] sm:$0xf]  ;;  %vm764_vm0 = vcmask 1043456   ;;  %v3481_v1 = vld [vmem:[%s5573_s1 + $0x10] sm:$0xf]  ;;  %p202_p4 = scmp.lt.s32.totalorder %s4429_s12, 1 }
   0xf   : > { %4358 = vmatprep.subr.msk.bf16.mxu1 %vm764_vm0, %v3349_v0  ;;  %4362 = vmatprep.subr.msk.bf16.mxu0 %vm764_vm0, %v3481_v1  ;;  %v766_v2 = vsel %vm764_vm0, %v3349_v0, 0  ;;  %v4487_v3 = vsel %vm764_vm0, %v3481_v1, 0  ;;  %v277_v4 = vld [vmem:[%s5573_s1] sm:$0xf]  ;;  %v3500_v5 = vld [vmem:[%s5573_s1 + $0x14] sm:$0xf] }
  0x10   : > { %5607 = vst [vmem:[#allocation2_spill] sm:$0xff] %v4487_v3  ;;  %3795 = vmatpush3.bf16.msra.mxu1 %v766_v2  ;;  %3931 = vmatpush3.bf16.msra.mxu0 %v4487_v3  ;;  %s5658_s12 = smov (!%p202_p4, %s4429_s12), 1  ;;  %vm278_vm1 = vsmask.f32 3328  ;;  %vm279_vm2 = vsmask.f32 7440 }
  0x11   : > { %4359 = vmatprep.subr.msk.bf16.mxu1 %vm764_vm0, %v277_v4  ;;  %4364 = vmatprep.subr.msk.bf16.mxu0 %vm764_vm0, %v3500_v5  ;;  %s4368_s24 = smul.u32 216, %s5658_s12  ;;  %v4507_v6 = vsel %vm764_vm0, %v277_v4, 0  ;;  %v4510_v7 = vsel %vm764_vm0, %v3500_v5, 0  ;;  %v4515_v8 = vld [vmem:[%s5573_s1 + $0x18] sm:$0xf]  ;;  %vm715_vm3 = vcmask 64512   ;;  %vm4551_vm4 = vmor %vm278_vm1, %vm279_vm2 }
  0x12   : > { %v4539_v20 = vsel %vm764_vm0, %v4515_v8, 0  ;;  %vm1237_vm5 = vcmask 1042432   ;;  %vm1238_vm6 = vcmask 1046532   ;;  %s3608_s19 = sshll.u32 %s5658_s12, 7  ;;  %vm3201_vm10 = vcmask 519168  }
  0x13   : > { %s4504_s27 = scalar_lea.vmem %s5572_s0, %s4368_s24  ;;  %vm4732_vm7 = vmor %vm1237_vm5, %vm1238_vm6  ;;  %s5461_s22 = scalar_lea.vmem %s5575_s3, %s3608_s19 }
  0x14   : > { %v4518_v9 = vld [vmem:[%s4504_s27] sm:$0xf]  ;;  %v4521_v10 = vld [vmem:[%s4504_s27 + $0x4] sm:$0xf]  ;;  %v225_v11 = vld [vmem:[%s4504_s27 + $0x8] sm:$0x1] }
  0x15   : > { %v282_v12 = vshrl.u32 %v4518_v9, 16  ;;  %v285_v13 = vshll.u32 %v4518_v9, 16  ;;  %v291_v14 = vshll.u32 %v4521_v10, 16  ;;  %v295_v15 = vshrl.u32 %v4521_v10, 16  ;;  %v4529_v16 = vld [vmem:[%s4504_s27 + $0xc] sm:$0xf] }
  0x16   : > { %v301_v17 = vshll.u32 %v225_v11, 16  ;;  %v4532_v18 = vld [vmem:[%s4504_s27 + $0x10] sm:$0xf]  ;;  %v4535_v19 = vld [vmem:[%s4504_s27 + $0x14] sm:$0x1]  ;;  %v306_v26 = vshrl.u32 %v4529_v16, 16 }
  0x17   : > { %v284_v21 = vrot.slane %v282_v12, 4  ;;  %v287_v22 = vrot.slane %v285_v13, 5  ;;  %v293_v23 = vrot.slane %v291_v14, 5  ;;  %v297_v24 = vrot.slane %v295_v15, 4  ;;  %v4547_v33 = vld [vmem:[%s4504_s27 + $0x18] sm:$0xf] }
  0x18   : > { %v303_v25 = vrot.slane %v301_v17, 5  ;;  %v309_v27 = vshll.u32 %v4529_v16, 16  ;;  %v315_v28 = vshll.u32 %v4532_v18, 16  ;;  %v319_v31 = vshrl.u32 %v4532_v18, 16  ;;  %v4560_v39 = vld [vmem:[%s4504_s27 + $0x1c] sm:$0xf] }
  0x19   : > { %v288_v29 = vor.u32 %v287_v22, %v284_v21  ;;  %v298_v30 = vor.u32 %v297_v24, %v293_v23  ;;  %v325_v32 = vshll.u32 %v4535_v19, 16  ;;  %v308_v35 = vrot.slane %v306_v26, 4  ;;  %v4564_v46 = vld [vmem:[%s4504_s27 + $0x20] sm:$0x1]  ;;  %v4574_v57 = vld [vmem:[%s4504_s27 + $0x24] sm:$0xf] }
  0x1a   : > { %v311_v36 = vrot.slane %v309_v27, 5  ;;  %v317_v37 = vrot.slane %v315_v28, 5  ;;  %v4557_v38 = vcombine.low %v4529_v16, %v4532_v18  ;;  %v321_v42 = vrot.slane %v319_v31, 4  ;;  %v4579_v62 = vld [vmem:[%s4504_s27 + $0x28] sm:$0xf] }
  0x1b   : > { %v289_v40 = vrot.slane %v288_v29, 4  ;;  %v299_v41 = vrot.slane %v298_v30, 4  ;;  %v327_v43 = vrot.slane %v325_v32, 5  ;;  %v1252_v45 = vrot.slane %v4535_v19, 5  ;;  %v4587_v4 = vld [vmem:[%s4504_s27 + $0x2c] sm:$0x1] }
  0x1c   : > { %v312_v44 = vor.u32 %v311_v36, %v308_v35  ;;  %v330_v47 = vshrl.u32 %v4547_v33, 16  ;;  %v333_v48 = vshll.u32 %v4547_v33, 16  ;;  %v322_v51 = vor.u32 %v321_v42, %v317_v37  ;;  %v4593_v14 = vld [vmem:[%s4504_s27 + $0x30] sm:$0xf]  ;;  %v4605_v28 = vld [vmem:[%s4504_s27 + $0x34] sm:$0xf] }
  0x1d   : > { %v294_v49 = vsel %vm4551_vm4, %v289_v40, %v293_v23  ;;  %v304_v50 = vsel %vm4551_vm4, %v299_v41, %v303_v25  ;;  %v339_v52 = vshll.u32 %v4560_v39, 16  ;;  %v343_v60 = vshrl.u32 %v4560_v39, 16  ;;  %v4600_v23 = vld [vmem:[%s5573_s1 + $0x8] sm:$0xf]  ;;  %v4612_v32 = vld [vmem:[%s4504_s27 + $0x38] sm:$0x1] }
  0x1e   : > { %v3350_v53 = vcombine.low %v294_v49, %v304_v50  ;;  %v313_v54 = vrot.slane %v312_v44, 4  ;;  %v332_v55 = vrot.slane %v330_v47, 4  ;;  %v335_v56 = vrot.slane %v333_v48, 5  ;;  %v4620_v48 = vld [vmem:[%s4504_s27 + $0x3c] sm:$0xf] }
  0x1f   : > { %v323_v58 = vrot.slane %v322_v51, 4  ;;  %v341_v59 = vrot.slane %v339_v52, 5  ;;  %v349_v61 = vshll.u32 %v4564_v46, 16  ;;  %v1256_v1 = vrot.slane %v4560_v39, 5  ;;  %v4628_v52 = vld [vmem:[%s4504_s27 + $0x40] sm:$0xf] }
  0x20   : > { %3796 = vmatprep.mubr.msk.bf16.mxu1 %vm715_vm3, %v3350_v53  ;;  %v318_v63 = vsel %vm4551_vm4, %v313_v54, %v317_v37  ;;  %v336_v0 = vor.u32 %v335_v56, %v332_v55  ;;  %v1259_v2 = vrot.slane %v4564_v46, 5  ;;  %v345_v11 = vrot.slane %v343_v60, 4 }
  0x21   : > { %v328_v5 = vsel %vm4551_vm4, %v323_v58, %v327_v43  ;;  %v351_v12 = vrot.slane %v349_v61, 5  ;;  %v354_v13 = vshrl.u32 %v4574_v57, 16  ;;  %v357_v21 = vshll.u32 %v4574_v57, 16 }
  0x22   : > { %v3351_v15 = vcombine.low %v318_v63, %v328_v5  ;;  %v337_v17 = vrot.slane %v336_v0, 4  ;;  %v363_v22 = vshll.u32 %v4579_v62, 16  ;;  %v346_v24 = vor.u32 %v345_v11, %v341_v59  ;;  %v4640_v5 = vld [vmem:[%s4504_s27 + $0x44] sm:$0x1] }
  0x23   : > { %v356_v25 = vrot.slane %v354_v13, 4  ;;  %v367_v26 = vshrl.u32 %v4579_v62, 16  ;;  %v373_v27 = vshll.u32 %v4587_v4, 16  ;;  %v359_v30 = vrot.slane %v357_v21, 5  ;;  %v4645_v13 = vld [vmem:[%s4504_s27 + $0x48] sm:$0xf] }
  0x24   : > { %3932 = vmatprep.mubr.msk.bf16.mxu0 %vm715_vm3, %v3351_v15  ;;  %3797 = vmatmul.mubr.msk.bf16.vlgmr.msra.gmra.mrb[0].mxu1 %vm715_vm3, %v3351_v15  ;;  %v342_v29 = vsel %vm4551_vm4, %v337_v17, %v341_v59  ;;  %v365_v31 = vrot.slane %v363_v22, 5  ;;  %v378_v35 = vshrl.u32 %v4593_v14, 16  ;;  %v347_v36 = vrot.slane %v346_v24, 4  ;;  %v4652_v24 = vld [vmem:[%s4504_s27 + $0x4c] sm:$0xf] }
  0x25   : > { %3829 = vmatpush3.bf16.msra.mxu1 %v4507_v6  ;;  %v369_v37 = vrot.slane %v367_v26, 4  ;;  %v375_v40 = vrot.slane %v373_v27, 5  ;;  %v381_v41 = vshll.u32 %v4593_v14, 16  ;;  %v360_v42 = vor.u32 %v359_v30, %v356_v25 }
  0x26   : > { %v380_v43 = vrot.slane %v378_v35, 4  ;;  %v387_v44 = vshll.u32 %v4605_v28, 16  ;;  %v391_v47 = vshrl.u32 %v4605_v28, 16  ;;  %4360 = vmatprep.subr.msk.bf16.mxu1 %vm764_vm0, %v4600_v23  ;;  %v352_v49 = vsel %vm4551_vm4, %v347_v36, %v351_v12 }
  0x27   : > { %v370_v6 = vor.u32 %v369_v37, %v365_v31  ;;  %v383_v50 = vrot.slane %v381_v41, 5  ;;  %v397_v51 = vshll.u32 %v4612_v32, 16  ;;  %v4630_v53 = vcombine.low %v342_v29, %v352_v49 }
  0x28   : > { %v361_v54 = vrot.slane %v360_v42, 4  ;;  %v389_v55 = vrot.slane %v387_v44, 5  ;;  %v393_v56 = vrot.slane %v391_v47, 4  ;;  %v402_v61 = vshrl.u32 %v4620_v48, 16  ;;  %v4674_v42 = vld [vmem:[%s4504_s27 + $0x54] sm:$0xf] }
  0x29   : > { %5610 = vst [vmem:[#allocation3_spill] sm:$0xff] %v4630_v53  ;;  %v371_v58 = vrot.slane %v370_v6, 4  ;;  %v384_v59 = vor.u32 %v383_v50, %v380_v43  ;;  %v399_v60 = vrot.slane %v397_v51, 5  ;;  %3933 = vmatmul.mubr.msk.bf16.vlgmr.msra.gmra.mrb[0].mxu0 %vm715_vm3, %v4630_v53  ;;  %3800 = vmatprep.mubr.msk.bf16.mxu1 %vm715_vm3, %v4630_v53  ;;  %v405_v11 = vshll.u32 %v4620_v48, 16  ;;  %5612 = vst [vmem:[#allocation5_spill] sm:$0xff] %v4674_v42 }
  0x2a   : > { %v366_v63 = vsel %vm4551_vm4, %v361_v54, %v365_v31  ;;  %v394_v0 = vor.u32 %v393_v56, %v389_v55  ;;  %v411_v12 = vshll.u32 %v4628_v52, 16  ;;  %3965 = vmatpush3.bf16.msra.mxu0 %v4510_v7  ;;  %v404_v21 = vrot.slane %v402_v61, 4  ;;  %v4679_v6 = vld [vmem:[%s4504_s27 + $0x58] sm:$0xf] }
  0x2b   : > { %v376_v15 = vsel %vm4551_vm4, %v371_v58, %v375_v40  ;;  %v385_v17 = vrot.slane %v384_v59, 4  ;;  %v415_v22 = vshrl.u32 %v4628_v52, 16  ;;  %v407_v27 = vrot.slane %v405_v11, 5  ;;  %4365 = vmatprep.subr.msk.bf16.mxu0 %vm764_vm0, %v4515_v8  ;;  %v4669_v8 = vld [vmem:[%s4504_s27 + $0x50] sm:$0x1] }
  0x2c   : > { %v4654_v25 = vcombine.low %v366_v63, %v376_v15  ;;  %v395_v26 = vrot.slane %v394_v0, 4  ;;  %v413_v29 = vrot.slane %v411_v12, 5  ;;  %v421_v31 = vshll.u32 %v4640_v5, 16  ;;  %v4692_v11 = vld [vmem:[%s4504_s27 + $0x5c] sm:$0x1] }
  0x2d   : > { %v390_v7 = vsel %vm4551_vm4, %v385_v17, %v389_v55  ;;  %v417_v30 = vrot.slane %v415_v22, 4  ;;  %v426_v35 = vshrl.u32 %v4645_v13, 16  ;;  %v408_v37 = vor.u32 %v407_v27, %v404_v21  ;;  %v4696_v15 = vld [vmem:[%s4504_s27 + $0x60] sm:$0xf]  ;;  %v4701_v27 = vld [vmem:[%s4504_s27 + $0x64] sm:$0xf] }
  0x2e   : > { %5611 = vst [vmem:[#allocation4_spill] sm:$0xff] %v4654_v25  ;;  %3936 = vmatprep.mubr.msk.bf16.mxu0 %vm715_vm3, %v4654_v25  ;;  %3801 = vmatmul.mubr.msk.bf16.gmra.mrb[4].mxu1 %vm715_vm3, %v4654_v25  ;;  %v400_v36 = vsel %vm4551_vm4, %v395_v26, %v399_v60  ;;  %v429_v40 = vshll.u32 %v4645_v13, 16  ;;  %v435_v41 = vshll.u32 %v4652_v24, 16  ;;  %v423_v47 = vrot.slane %v421_v31, 5  ;;  %v4913_v25 = vld [vmem:[%s4504_s27 + $0xa8] sm:$0xf] }
  0x2f   : > { %v4676_v43 = vcombine.low %v390_v7, %v400_v36  ;;  %v418_v44 = vor.u32 %v417_v30, %v413_v29  ;;  %v428_v49 = vrot.slane %v426_v35, 4  ;;  %v409_v50 = vrot.slane %v408_v37, 4 }
  0x30   : > { %v431_v51 = vrot.slane %v429_v40, 5  ;;  %v437_v54 = vrot.slane %v435_v41, 5  ;;  %v439_v55 = vshrl.u32 %v4652_v24, 16  ;;  %v445_v58 = vshll.u32 %v4669_v8, 16 }
  0x31   : > { %5613 = vst [vmem:[#allocation6_spill] sm:$0xff] %v4676_v43  ;;  %3804 = vmatprep.mubr.msk.bf16.mxu1 %vm715_vm3, %v4676_v43  ;;  %v419_v56 = vrot.slane %v418_v44, 4  ;;  %v450_v59 = vshrl.u32 %v4674_v42, 16  ;;  %v453_v60 = vshll.u32 %v4674_v42, 16  ;;  %3937 = vmatmul.mubr.msk.bf16.gmra.mrb[4].mxu0 %vm715_vm3, %v4676_v43  ;;  %v414_v61 = vsel %vm4551_vm4, %v409_v50, %v413_v29 }
  0x32   : > { %v432_v63 = vor.u32 %v431_v51, %v428_v49  ;;  %v441_v0 = vrot.slane %v439_v55, 4  ;;  %v459_v12 = vshll.u32 %v4679_v6, 16  ;;  %v447_v21 = vrot.slane %v445_v58, 5 }
  0x33   : > { %v424_v17 = vsel %vm4551_vm4, %v419_v56, %v423_v47  ;;  %v452_v22 = vrot.slane %v450_v59, 4  ;;  %v455_v26 = vrot.slane %v453_v60, 5  ;;  %v463_v36 = vshrl.u32 %v4679_v6, 16  ;;  %v4715_v47 = vld [vmem:[%s4504_s27 + $0x68] sm:$0x1] }
  0x34   : > { %v4703_v7 = vcombine.low %v414_v61, %v424_v17  ;;  %v433_v29 = vrot.slane %v432_v63, 4  ;;  %v442_v30 = vor.u32 %v441_v0, %v437_v54  ;;  %v461_v31 = vrot.slane %v459_v12, 5 }
  0x35   : > { %v456_v35 = vor.u32 %v455_v26, %v452_v22  ;;  %v469_v37 = vshll.u32 %v4692_v11, 16  ;;  %v474_v40 = vshrl.u32 %v4696_v15, 16  ;;  %v477_v49 = vshll.u32 %v4696_v15, 16 }
  0x36   : > { %5614 = vst [vmem:[#allocation7_spill] sm:$0xff] %v4703_v7  ;;  %3940 = vmatprep.mubr.msk.bf16.mxu0 %vm715_vm3, %v4703_v7  ;;  %3805 = vmatmul.mubr.msk.bf16.gmra.mrb[8].mxu1 %vm715_vm3, %v4703_v7  ;;  %v438_v41 = vsel %vm4551_vm4, %v433_v29, %v437_v54  ;;  %v443_v44 = vrot.slane %v442_v30, 4  ;;  %v483_v50 = vshll.u32 %v4701_v27, 16  ;;  %v465_v55 = vrot.slane %v463_v36, 4  ;;  %v4723_v54 = vld [vmem:[%s4504_s27 + $0x6c] sm:$0xf] }
  0x37   : > { %v457_v51 = vrot.slane %v456_v35, 4  ;;  %v471_v56 = vrot.slane %v469_v37, 5  ;;  %v476_v58 = vrot.slane %v474_v40, 4  ;;  %v479_v60 = vrot.slane %v477_v49, 5  ;;  %v4739_v36 = vld [vmem:[%s4504_s27 + $0x70] sm:$0xf] }
  0x38   : > { %v448_v59 = vsel %vm4551_vm4, %v443_v44, %v447_v21  ;;  %v485_v61 = vrot.slane %v483_v50, 5  ;;  %v487_v63 = vshrl.u32 %v4701_v27, 16  ;;  %v466_v17 = vor.u32 %v465_v55, %v461_v31  ;;  %v4890_v7 = vld [vmem:[%s4504_s27 + $0xa0] sm:$0xf] }
  0x39   : > { %v4725_v0 = vcombine.low %v438_v41, %v448_v59  ;;  %v462_v12 = vsel %vm4551_vm4, %v457_v51, %v461_v31  ;;  %v493_v22 = vshll.u32 %v4715_v47, 16  ;;  %v480_v21 = vor.u32 %v479_v60, %v476_v58  ;;  %v4752_v51 = vld [vmem:[%s4504_s27 + $0x74] sm:$0x1] }
  0x3a   : > { %v489_v29 = vrot.slane %v487_v63, 4  ;;  %v3415_v30 = vrot.slane %v4529_v16, 9  ;;  %v1249_v35 = vrot.slane %v4532_v18, 5  ;;  %v467_v31 = vrot.slane %v466_v17, 4 }
  0x3b   : > { %5615 = vst [vmem:[#allocation8_spill] sm:$0xff] %v4725_v0  ;;  %3941 = vmatmul.mubr.msk.bf16.gmra.mrb[8].mxu0 %vm715_vm3, %v4725_v0  ;;  %3808 = vmatprep.mubr.msk.bf16.mxu1 %vm715_vm3, %v4725_v0  ;;  %v495_v37 = vrot.slane %v493_v22, 5  ;;  %v498_v40 = vshrl.u32 %v4723_v54, 16  ;;  %v501_v41 = vshll.u32 %v4723_v54, 16  ;;  %v481_v44 = vrot.slane %v480_v21, 4 }
  0x3c   : > { %v490_v49 = vor.u32 %v489_v29, %v485_v61  ;;  %v1250_v16 = vsel %vm4732_vm7, %v3415_v30, %v1249_v35  ;;  %v1251_v18 = vrot.slane %v1249_v35, 4  ;;  %v472_v50 = vsel %vm4551_vm4, %v467_v31, %v471_v56  ;;  %v4764_v56 = vld [vmem:[%s4504_s27 + $0x78] sm:$0xf]  ;;  %v4780_v31 = vld [vmem:[%s4504_s27 + $0x7c] sm:$0xf] }
  0x3d   : > { %v500_v55 = vrot.slane %v498_v40, 4  ;;  %v503_v58 = vrot.slane %v501_v41, 5  ;;  %v507_v59 = vshll.u32 %v4739_v36, 16  ;;  %v4755_v60 = vcombine.low %v462_v12, %v472_v50 }
  0x3e   : > { %v486_v63 = vsel %vm4551_vm4, %v481_v44, %v485_v61  ;;  %v491_v17 = vrot.slane %v490_v49, 4  ;;  %v1253_v22 = vsel %vm4732_vm7, %v1251_v18, %v1252_v45  ;;  %v511_v35 = vshrl.u32 %v4739_v36, 16  ;;  %v4785_v49 = vld [vmem:[%s4504_s27 + $0x80] sm:$0x1] }
  0x3f   : > { %5618 = vst [vmem:[#allocation9_spill] sm:$0xff] %v4755_v60  ;;  %v4766_v21 = vcombine.low %v1250_v16, %v1253_v22  ;;  %v504_v29 = vor.u32 %v503_v58, %v500_v55  ;;  %v509_v30 = vrot.slane %v507_v59, 5  ;;  %3944 = vmatprep.mubr.msk.bf16.mxu0 %vm715_vm3, %v4755_v60  ;;  %3809 = vmatmul.mubr.msk.bf16.gmra.mrb[12].mxu1 %vm715_vm3, %v4755_v60  ;;  %v517_v45 = vshll.u32 %v4752_v51, 16  ;;  %v4883_v60 = vld [vmem:[%s4504_s27 + $0x9c] sm:$0xf] }
  0x40   : > { %v496_v19 = vsel %vm4551_vm4, %v491_v17, %v495_v37  ;;  %v3416_v61 = vrot.slane %v4547_v33, 9  ;;  %v1258_v12 = vrot.slane %v1256_v1, 4  ;;  %v513_v44 = vrot.slane %v511_v35, 4 }
  0x41   : > { %5619 = vst [vmem:[#allocation10_spill] sm:$0xff] %v4766_v21  ;;  %v4782_v40 = vcombine.low %v486_v63, %v496_v19  ;;  %v505_v41 = vrot.slane %v504_v29, 4  ;;  %v522_v16 = vshrl.u32 %v4764_v56, 16  ;;  %v519_v18 = vrot.slane %v517_v45, 5  ;;  %v4811_v29 = vld [vmem:[%s4504_s27 + $0x84] sm:$0xf] }
  0x42   : > { %v1257_v37 = vsel %vm4732_vm7, %v3416_v61, %v1256_v1  ;;  %v1260_v50 = vsel %vm4732_vm7, %v1258_v12, %v1259_v2  ;;  %v525_v55 = vshll.u32 %v4764_v56, 16  ;;  %v514_v59 = vor.u32 %v513_v44, %v509_v30 }
  0x43   : > { %5620 = vst [vmem:[#allocation11_spill] sm:$0xff] %v4782_v40  ;;  %3945 = vmatmul.mubr.msk.bf16.gmra.mrb[12].mxu0 %vm715_vm3, %v4782_v40  ;;  %3812 = vmatprep.mubr.msk.bf16.mxu1 %vm715_vm3, %v4782_v40  ;;  %v510_v58 = vsel %vm4551_vm4, %v505_v41, %v509_v30  ;;  %v4803_v63 = vcombine.low %v1257_v37, %v1260_v50  ;;  %v524_v1 = vrot.slane %v522_v16, 4  ;;  %v531_v2 = vshll.u32 %v4780_v31, 16  ;;  %v4817_v16 = vld [vmem:[%s4504_s27 + $0x88] sm:$0xf] }
  0x44   : > { %3966 = vmatprep.mubr.msk.bf16.mxu0 %vm715_vm3, %v4766_v21  ;;  %v527_v46 = vrot.slane %v525_v55, 5  ;;  %v535_v17 = vshrl.u32 %v4780_v31, 16  ;;  %v541_v22 = vshll.u32 %v4785_v49, 16  ;;  %v515_v35 = vrot.slane %v514_v59, 4 }
  0x45   : > { %5621 = vst [vmem:[#allocation12_spill] sm:$0xff] %v4803_v63  ;;  %v3417_v30 = vrot.slane %v4574_v57, 9  ;;  %v1263_v19 = vrot.slane %v4579_v62, 5  ;;  %v1266_v45 = vrot.slane %v4587_v4, 5  ;;  %v533_v12 = vrot.slane %v531_v2, 5 }
  0x46   : > { %v528_v61 = vor.u32 %v527_v46, %v524_v1  ;;  %v537_v41 = vrot.slane %v535_v17, 4  ;;  %v543_v44 = vrot.slane %v541_v22, 5  ;;  %v520_v37 = vsel %vm4551_vm4, %v515_v35, %v519_v18  ;;  %v4827_v1 = vld [vmem:[%s4504_s27 + $0x8c] sm:$0x1] }
  0x47   : > { %v1264_v50 = vsel %vm4732_vm7, %v3417_v30, %v1263_v19  ;;  %v1265_v55 = vrot.slane %v1263_v19, 4  ;;  %v546_v59 = vshrl.u32 %v4811_v29, 16  ;;  %v4824_v3 = vcombine.low %v510_v58, %v520_v37 }
  0x48   : > { %v529_v40 = vrot.slane %v528_v61, 4  ;;  %v538_v4 = vor.u32 %v537_v41, %v533_v12  ;;  %v549_v46 = vshll.u32 %v4811_v29, 16  ;;  %v555_v18 = vshll.u32 %v4817_v16, 16  ;;  %v4841_v61 = vld [vmem:[%s4504_s27 + $0x90] sm:$0xf] }
  0x49   : > { %5622 = vst [vmem:[#allocation13_spill] sm:$0xff] %v4824_v3  ;;  %v1267_v2 = vsel %vm4732_vm7, %v1265_v55, %v1266_v45  ;;  %v548_v17 = vrot.slane %v546_v59, 4  ;;  %v559_v22 = vshrl.u32 %v4817_v16, 16  ;;  %3813 = vmatmul.mubr.msk.bf16.gmra.mrb[16].mxu1 %vm715_vm3, %v4824_v3  ;;  %v4846_v45 = vld [vmem:[%s5573_s1 + $0x1c] sm:$0xf]  ;;  %v1270_v59 = vrot.slane %v4605_v28, 5 }
  0x4a   : > { %v534_v58 = vsel %vm4551_vm4, %v529_v40, %v533_v12  ;;  %v539_v35 = vrot.slane %v538_v4, 4  ;;  %v4838_v30 = vcombine.low %v1264_v50, %v1267_v2  ;;  %v551_v19 = vrot.slane %v549_v46, 5  ;;  %5624 = vst [vmem:[#allocation15_spill] sm:$0xff] %v4846_v45  ;;  %v4860_v46 = vld [vmem:[%s4504_s27 + $0x94] sm:$0xf] }
  0x4b   : > { %3967 = vmatmul.mubr.msk.bf16.vlgmr.msra.gmra.mrb[0].mxu0 %vm715_vm3, %v4803_v63  ;;  %v557_v41 = vrot.slane %v555_v18, 5  ;;  %v561_v37 = vrot.slane %v559_v22, 4  ;;  %v565_v40 = vshll.u32 %v4827_v1, 16  ;;  %v3418_v12 = vrot.slane %v4593_v14, 9  ;;  %v4865_v3 = vld [vmem:[%s4504_s27 + $0x98] sm:$0x1] }
  0x4c   : > { %5623 = vst [vmem:[#allocation14_spill] sm:$0xff] %v4838_v30  ;;  %3999 = vmatpush3.bf16.msra.mxu0 %v4539_v20  ;;  %v544_v50 = vsel %vm4551_vm4, %v539_v35, %v543_v44  ;;  %3970 = vmatprep.mubr.msk.bf16.mxu0 %vm715_vm3, %v4838_v30  ;;  %v552_v55 = vor.u32 %v551_v19, %v548_v17  ;;  %v1273_v4 = vrot.slane %v4612_v32, 5  ;;  %v570_v20 = vshrl.u32 %v4841_v61, 16 }
  0x4d   : > { %v4862_v2 = vcombine.low %v534_v58, %v544_v50  ;;  %v562_v18 = vor.u32 %v561_v37, %v557_v41  ;;  %v567_v22 = vrot.slane %v565_v40, 5  ;;  %4366 = vmatprep.subr.msk.bf16.mxu0 %vm764_vm0, %v4846_v45  ;;  %v1271_v17 = vsel %vm4732_vm7, %v3418_v12, %v1270_v59 }
  0x4e   : > { %v553_v44 = vrot.slane %v552_v55, 4  ;;  %v1272_v35 = vrot.slane %v1270_v59, 4  ;;  %v573_v32 = vshll.u32 %v4841_v61, 16  ;;  %v572_v19 = vrot.slane %v570_v20, 4 }
  0x4f   : > { %5625 = vst [vmem:[#allocation16_spill] sm:$0xff] %v4862_v2  ;;  %3816 = vmatprep.mubr.msk.bf16.mxu1 %vm715_vm3, %v4862_v2  ;;  %v563_v58 = vrot.slane %v562_v18, 4  ;;  %v579_v37 = vshll.u32 %v4860_v46, 16  ;;  %v583_v40 = vshrl.u32 %v4860_v46, 16  ;;  %v589_v59 = vshll.u32 %v4865_v3, 16 }
  0x50   : > { %v558_v50 = vsel %vm4551_vm4, %v553_v44, %v557_v41  ;;  %v1274_v55 = vsel %vm4732_vm7, %v1272_v35, %v1273_v4  ;;  %v575_v12 = vrot.slane %v573_v32, 5  ;;  %v3419_v4 = vrot.slane %v4620_v48, 9 }
  0x51   : > { %v568_v2 = vsel %vm4551_vm4, %v563_v58, %v567_v22  ;;  %v4887_v18 = vcombine.low %v1271_v17, %v1274_v55  ;;  %v581_v20 = vrot.slane %v579_v37, 5  ;;  %v585_v0 = vrot.slane %v583_v40, 4  ;;  %v4903_v58 = vld [vmem:[%s4504_s27 + $0xa4] sm:$0x1] }
  0x52   : > { %v4892_v43 = vcombine.low %v558_v50, %v568_v2  ;;  %v576_v41 = vor.u32 %v575_v12, %v572_v19  ;;  %v591_v44 = vrot.slane %v589_v59, 5  ;;  %v1277_v32 = vrot.slane %v4628_v52, 5 }
  0x53   : > { %5626 = vst [vmem:[#allocation17_spill] sm:$0xff] %v4887_v18  ;;  %3971 = vmatmul.mubr.msk.bf16.gmra.mrb[4].mxu0 %vm715_vm3, %v4887_v18  ;;  %v586_v35 = vor.u32 %v585_v0, %v581_v20  ;;  %v1280_v22 = vrot.slane %v4640_v5, 5  ;;  %v594_v17 = vshrl.u32 %v4883_v60, 16  ;;  %v597_v19 = vshll.u32 %v4883_v60, 16 }
  0x54   : > { %5627 = vst [vmem:[#allocation18_spill] sm:$0xff] %v4892_v43  ;;  %3817 = vmatmul.mubr.msk.bf16.gmra.mrb[20].mxu1 %vm715_vm3, %v4892_v43  ;;  %v577_v2 = vrot.slane %v576_v41, 4  ;;  %v603_v37 = vshll.u32 %v4890_v7, 16  ;;  %v607_v0 = vshrl.u32 %v4890_v7, 16  ;;  %v1278_v5 = vsel %vm4732_vm7, %v3419_v4, %v1277_v32 }
  0x55   : > { %v587_v40 = vrot.slane %v586_v35, 4  ;;  %v1279_v50 = vrot.slane %v1277_v32, 4  ;;  %v596_v55 = vrot.slane %v594_v17, 4  ;;  %v599_v59 = vrot.slane %v597_v19, 5  ;;  %v4922_v32 = vld [vmem:[%s4504_s27 + $0xac] sm:$0xf] }
  0x56   : > { %v582_v12 = vsel %vm4551_vm4, %v577_v2, %v581_v20  ;;  %v605_v41 = vrot.slane %v603_v37, 5  ;;  %v609_v43 = vrot.slane %v607_v0, 4  ;;  %v613_v35 = vshll.u32 %v4903_v58, 16 }
  0x57   : > { %v592_v53 = vsel %vm4551_vm4, %v587_v40, %v591_v44  ;;  %v1281_v18 = vsel %vm4732_vm7, %v1279_v50, %v1280_v22  ;;  %v3420_v4 = vrot.slane %v4645_v13, 9  ;;  %v600_v2 = vor.u32 %v599_v59, %v596_v55 }
  0x58   : > { %v4924_v17 = vcombine.low %v582_v12, %v592_v53  ;;  %v4926_v20 = vcombine.low %v1278_v5, %v1281_v18  ;;  %v610_v19 = vor.u32 %v609_v43, %v605_v41  ;;  %v615_v37 = vrot.slane %v613_v35, 5  ;;  %v4936_v18 = vld [vmem:[%s4504_s27 + $0xb0] sm:$0x1] }
  0x59   : > { %v1284_v0 = vrot.slane %v4652_v24, 5  ;;  %v1287_v44 = vrot.slane %v4669_v8, 5  ;;  %v618_v22 = vshrl.u32 %v4913_v25, 16  ;;  %v601_v53 = vrot.slane %v600_v2, 4 }
  0x5a   : > { %5628 = vst [vmem:[#allocation19_spill] sm:$0xff] %v4924_v17  ;;  %5629 = vst [vmem:[#allocation20_spill] sm:$0xff] %v4926_v20  ;;  %3820 = vmatprep.mubr.msk.bf16.mxu1 %vm715_vm3, %v4924_v17  ;;  %3974 = vmatprep.mubr.msk.bf16.mxu0 %vm715_vm3, %v4926_v20  ;;  %v611_v40 = vrot.slane %v610_v19, 4  ;;  %v621_v43 = vshll.u32 %v4913_v25, 16  ;;  %v627_v5 = vshll.u32 %v4922_v32, 16  ;;  %v631_v12 = vshrl.u32 %v4922_v32, 16 }
  0x5b   : > { %v1285_v8 = vsel %vm4732_vm7, %v3420_v4, %v1284_v0  ;;  %v1286_v50 = vrot.slane %v1284_v0, 4  ;;  %v620_v55 = vrot.slane %v618_v22, 4  ;;  %v606_v59 = vsel %vm4551_vm4, %v601_v53, %v605_v41  ;;  %v4948_v17 = vld [vmem:[%s4504_s27 + $0xb4] sm:$0xf]  ;;  %v4960_v53 = vld [vmem:[%s4504_s27 + $0xb8] sm:$0xf] }
  0x5c   : > { %v616_v35 = vsel %vm4551_vm4, %v611_v40, %v615_v37  ;;  %v623_v2 = vrot.slane %v621_v43, 5  ;;  %v629_v19 = vrot.slane %v627_v5, 5  ;;  %v633_v0 = vrot.slane %v631_v12, 4 }
  0x5d   : > { %v4950_v20 = vcombine.low %v606_v59, %v616_v35  ;;  %v1288_v4 = vsel %vm4732_vm7, %v1286_v50, %v1287_v44  ;;  %v637_v22 = vshll.u32 %v4936_v18, 16  ;;  %v3421_v41 = vrot.slane %v4674_v42, 9  ;;  %v4966_v44 = vld [vmem:[%s4504_s27 + $0xbc] sm:$0x1] }
  0x5e   : > { %v4955_v30 = vcombine.low %v1285_v8, %v1288_v4  ;;  %v624_v63 = vor.u32 %v623_v2, %v620_v55  ;;  %v1291_v37 = vrot.slane %v4679_v6, 5  ;;  %v634_v40 = vor.u32 %v633_v0, %v629_v19 }
  0x5f   : > { %5630 = vst [vmem:[#allocation21_spill] sm:$0xff] %v4950_v20  ;;  %3821 = vmatmul.mubr.msk.bf16.gmra.mrb[24].mxu1 %vm715_vm3, %v4950_v20  ;;  %v639_v43 = vrot.slane %v637_v22, 5  ;;  %v1294_v5 = vrot.slane %v4692_v11, 5  ;;  %v642_v50 = vshrl.u32 %v4948_v17, 16  ;;  %v645_v59 = vshll.u32 %v4948_v17, 16 }
  0x60   : > { %5631 = vst [vmem:[#allocation22_spill] sm:$0xff] %v4955_v30  ;;  %3975 = vmatmul.mubr.msk.bf16.gmra.mrb[8].mxu0 %vm715_vm3, %v4955_v30  ;;  %v625_v8 = vrot.slane %v624_v63, 4  ;;  %v1292_v55 = vsel %vm4732_vm7, %v3421_v41, %v1291_v37  ;;  %v1293_v12 = vrot.slane %v1291_v37, 4  ;;  %v635_v35 = vrot.slane %v634_v40, 4 }
  0x61   : > { %v644_v2 = vrot.slane %v642_v50, 4  ;;  %v651_v4 = vshll.u32 %v4960_v53, 16  ;;  %v655_v11 = vshrl.u32 %v4960_v53, 16  ;;  %v647_v20 = vrot.slane %v645_v59, 5 }
  0x62   : > { %v630_v0 = vsel %vm4551_vm4, %v625_v8, %v629_v19  ;;  %v1295_v22 = vsel %vm4732_vm7, %v1293_v12, %v1294_v5  ;;  %v661_v63 = vshll.u32 %v4966_v44, 16  ;;  %v640_v41 = vsel %vm4551_vm4, %v635_v35, %v639_v43 }
  0x63   : > { %v4983_v37 = vcombine.low %v1292_v55, %v1295_v22  ;;  %v653_v40 = vrot.slane %v651_v4, 5  ;;  %v657_v50 = vrot.slane %v655_v11, 4  ;;  %v4985_v30 = vcombine.low %v630_v0, %v640_v41 }
  0x64   : > { %v648_v21 = vor.u32 %v647_v20, %v644_v2  ;;  %v663_v45 = vrot.slane %v661_v63, 5  ;;  %v3422_v42 = vrot.slane %v4696_v15, 9  ;;  %v1298_v5 = vrot.slane %v4701_v27, 5 }
  0x65   : > { %3978 = vmatprep.mubr.msk.bf16.mxu0 %vm715_vm3, %v4983_v37  ;;  %v658_v19 = vor.u32 %v657_v50, %v653_v40  ;;  %v1301_v8 = vrot.slane %v4715_v47, 5  ;;  %v3423_v43 = vrot.slane %v4723_v54, 9  ;;  %3824 = vmatprep.mubr.msk.bf16.mxu1 %vm715_vm3, %v4985_v30  ;;  %v3382_v20 = vcombine.low %v4518_v9, %v4521_v10 }
  0x66   : > { %v649_v55 = vrot.slane %v648_v21, 4  ;;  %v1305_v12 = vrot.slane %v4739_v36, 5  ;;  %v1308_v59 = vrot.slane %v4752_v51, 5  ;;  %v1299_v2 = vsel %vm4732_vm7, %v3422_v42, %v1298_v5 }
  0x67   : > { %v659_v35 = vrot.slane %v658_v19, 4  ;;  %v1300_v4 = vrot.slane %v1298_v5, 4  ;;  %v1312_v47 = vrot.slane %v4780_v31, 5  ;;  %v3424_v9 = vrot.slane %v4764_v56, 9 }
  0x68   : > { %v654_v11 = vsel %vm4551_vm4, %v649_v55, %v653_v40  ;;  %v1306_v21 = vsel %vm4732_vm7, %v3423_v43, %v1305_v12  ;;  %v1307_v0 = vrot.slane %v1305_v12, 4  ;;  %v1315_v42 = vrot.slane %v4785_v49, 5 }
  0x69   : > { %v664_v10 = vsel %vm4551_vm4, %v659_v35, %v663_v45  ;;  %v1302_v51 = vsel %vm4732_vm7, %v1300_v4, %v1301_v8  ;;  %v1314_v22 = vrot.slane %v1312_v47, 4  ;;  %v3425_v19 = vrot.slane %v4811_v29, 9 }
  0x6a   : > { %v5012_v63 = vcombine.low %v654_v11, %v664_v10  ;;  %v5014_v41 = vcombine.low %v1299_v2, %v1302_v51  ;;  %v1309_v40 = vsel %vm4732_vm7, %v1307_v0, %v1308_v59  ;;  %v1319_v5 = vrot.slane %v4817_v16, 5 }
  0x6b   : > { %v5018_v50 = vcombine.low %v1306_v21, %v1309_v40  ;;  %v1322_v49 = vrot.slane %v4827_v1, 5  ;;  %v1313_v45 = vsel %vm4732_vm7, %v3424_v9, %v1312_v47  ;;  %v1316_v8 = vsel %vm4732_vm7, %v1314_v22, %v1315_v42 }
  0x6c   : > { %3825 = vmatmul.mubr.msk.bf16.gmra.mrb[28].mxu1 %vm715_vm3, %v5012_v63  ;;  %3979 = vmatmul.mubr.msk.bf16.gmra.mrb[12].mxu0 %vm715_vm3, %v5014_v41  ;;  %v1321_v43 = vrot.slane %v1319_v5, 4  ;;  %v1326_v55 = vrot.slane %v4860_v46, 5  ;;  %v1333_v12 = vrot.slane %v4890_v7, 5  ;;  %v1320_v59 = vsel %vm4732_vm7, %v3425_v19, %v1319_v5 }
  0x6d   : > { %3830 = vmatprep.mubr.msk.bf16.mxu1 %vm715_vm3, %v3382_v20  ;;  %3982 = vmatprep.mubr.msk.bf16.mxu0 %vm715_vm3, %v5018_v50  ;;  %v5040_v20 = vcombine.low %v1313_v45, %v1316_v8  ;;  %v3426_v35 = vrot.slane %v4841_v61, 9  ;;  %v1329_v4 = vrot.slane %v4865_v3, 5  ;;  %v5046_v47 = vcombine.low %v4547_v33, %v4560_v39  ;;  %v5058_v3 = vld [vmem:[%s5573_s1 + $0xc] sm:$0xf] }
  0x6e   : > { %v1323_v1 = vsel %vm4732_vm7, %v1321_v43, %v1322_v49  ;;  %v1328_v2 = vrot.slane %v1326_v55, 4  ;;  %v3427_v11 = vrot.slane %v4883_v60, 9  ;;  %v1451_v21 = vsel %vm764_vm0, %v4600_v23, 0 }
  0x6f   : > { %v5051_v0 = vcombine.low %v1320_v59, %v1323_v1  ;;  %v1335_v9 = vrot.slane %v1333_v12, 4  ;;  %v1336_v10 = vrot.slane %v4903_v58, 5  ;;  %v1340_v51 = vrot.slane %v4922_v32, 5 }
  0x70   : > { %v1327_v33 = vsel %vm4732_vm7, %v3426_v35, %v1326_v55  ;;  %v1330_v39 = vsel %vm4732_vm7, %v1328_v2, %v1329_v4  ;;  %v5072_v23 = vcombine.low %v4574_v57, %v4579_v62  ;;  %v1334_v58 = vsel %vm4732_vm7, %v3427_v11, %v1333_v12 }
  0x71   : > { %v5078_v22 = vcombine.low %v4696_v15, %v4701_v27  ;;  %v1337_v42 = vsel %vm4732_vm7, %v1335_v9, %v1336_v10  ;;  %v3428_v40 = vrot.slane %v4913_v25, 9  ;;  %v1347_v19 = vrot.slane %v4960_v53, 5 }
  0x72   : > { %v5088_v57 = vcombine.low %v4723_v54, %v4739_v36  ;;  %v5092_v62 = vcombine.low %v1327_v33, %v1330_v39  ;;  %v1342_v15 = vrot.slane %v1340_v51, 4  ;;  %v1343_v27 = vrot.slane %v4936_v18, 5  ;;  %v273_v18 = vld [vmem:[%s4504_s27 + $0xc8] sm:$0x1] }
  0x73   : > { %v5097_v5 = vcombine.low %v4764_v56, %v4780_v31  ;;  %v5101_v49 = vcombine.low %v4811_v29, %v4817_v16  ;;  %v5105_v54 = vcombine.low %v4841_v61, %v4860_v46  ;;  %v5109_v36 = vcombine.low %v4883_v60, %v4890_v7  ;;  %v5128_v61 = vld [vmem:[%s4504_s27 + $0xc4] sm:$0xf] }
  0x74   : > { %3831 = vmatmul.mubr.msk.bf16.vlgmr.msra.gmra.mrb[0].mxu1 %vm715_vm3, %v4557_v38  ;;  %3983 = vmatmul.mubr.msk.bf16.gmra.mrb[16].mxu0 %vm715_vm3, %v5040_v20  ;;  %v5113_v45 = vcombine.low %v4913_v25, %v4922_v32  ;;  %v5117_v56 = vcombine.low %v4593_v14, %v4605_v28  ;;  %v5119_v31 = vcombine.low %v1334_v58, %v1337_v42  ;;  %v3429_v16 = vrot.slane %v4948_v17, 9  ;;  %v5632_v42 = vld [vmem:[#allocation5_spill] sm:$0xff] }
  0x75   : > { %3863 = vmatpush3.bf16.msra.mxu1 %v1451_v21  ;;  %3834 = vmatprep.mubr.msk.bf16.mxu1 %vm715_vm3, %v5046_v47  ;;  %v5123_v29 = vcombine.low %v4948_v17, %v4960_v53  ;;  %v1349_v7 = vrot.slane %v1347_v19, 4  ;;  %v1350_v60 = vrot.slane %v4966_v44, 5  ;;  %v1341_v14 = vsel %vm4732_vm7, %v3428_v40, %v1340_v51  ;;  %v5148_v17 = vld [vmem:[%s4504_s27 + $0xc0] sm:$0xf] }
  0x76   : > { %3986 = vmatprep.mubr.msk.bf16.mxu0 %vm715_vm3, %v5051_v0  ;;  %4361 = vmatprep.subr.msk.bf16.mxu1 %vm764_vm0, %v5058_v3  ;;  %v1344_v28 = vsel %vm4732_vm7, %v1342_v15, %v1343_v27  ;;  %v2083_v25 = vrot.slane %v5128_v61, 5  ;;  %v1348_v46 = vsel %vm4732_vm7, %v3429_v16, %v1347_v19  ;;  %v5153_v53 = vcombine.low %v4620_v48, %v4628_v52 }
  0x77   : > { %v1351_v32 = vsel %vm4732_vm7, %v1349_v7, %v1350_v60  ;;  %v5155_v44 = vcombine.low %v1341_v14, %v1344_v28  ;;  %v5159_v8 = vcombine.low %v4645_v13, %v4652_v24  ;;  %v1853_v43 = vshrl.u32 %v5148_v17, 16  ;;  %v3555_v60 = vld [vmem:[%s5573_s1 + $0x20] sm:$0xf]  ;;  %v4411_v14 = vld [vmem:[%s4504_s27 + $0x4] sm:$0xf] }
  0x78   : > { %v1856_v55 = vshll.u32 %v5148_v17, 16  ;;  %v1862_v12 = vshll.u32 %v5128_v61, 16  ;;  %v1866_v59 = vshrl.u32 %v5128_v61, 16  ;;  %v5165_v1 = vcombine.low %v1348_v46, %v1351_v32  ;;  %v4413_v32 = vld [vmem:[%s4504_s27] sm:$0xf] }
  0x79   : > { %v3499_v35 = vrot.slane %v5148_v17, 9  ;;  %v2085_v48 = vrot.slane %v2083_v25, 4  ;;  %v2086_v52 = vrot.slane %v273_v18, 5  ;;  %v1855_v2 = vrot.slane %v1853_v43, 4 }
  0x7a   : > { %v1858_v4 = vrot.slane %v1856_v55, 5  ;;  %v1864_v11 = vrot.slane %v1862_v12, 5  ;;  %v1868_v21 = vrot.slane %v1866_v59, 4  ;;  %v1872_v9 = vshll.u32 %v273_v18, 16 }
  0x7b   : > { %v2084_v10 = vsel %vm4732_vm7, %v3499_v35, %v2083_v25  ;;  %v2087_v51 = vsel %vm4732_vm7, %v2085_v48, %v2086_v52  ;;  %v5182_v40 = vcombine.low %v5632_v42, %v4679_v6  ;;  %v5633_v6 = vld [vmem:[#allocation15_spill] sm:$0xff]  ;;  %v1242_v28 = vrot.slane %v4411_v14, 5  ;;  %v5634_v48 = vld [vmem:[#allocation10_spill] sm:$0xff]  ;;  %v5635_v52 = vld [vmem:[#allocation12_spill] sm:$0xff] }
  0x7c   : > { %3835 = vmatmul.mubr.msk.bf16.gmra.mrb[4].mxu1 %vm715_vm3, %v5072_v23  ;;  %3987 = vmatmul.mubr.msk.bf16.gmra.mrb[20].mxu0 %vm715_vm3, %v5092_v62  ;;  %v1859_v13 = vor.u32 %v1858_v4, %v1855_v2  ;;  %v1869_v24 = vor.u32 %v1868_v21, %v1864_v11  ;;  %v1874_v58 = vrot.slane %v1872_v9, 5  ;;  %v5184_v19 = vcombine.low %v2084_v10, %v2087_v51  ;;  %v4412_v25 = vld [vmem:[%s4504_s27 + $0x8] sm:$0x1]  ;;  %v4414_v2 = vld [vmem:[%s5573_s1 + $0x10] sm:$0xf]  ;;  %v5637_v4 = vld [vmem:[#allocation17_spill] sm:$0xff] }
  0x7d   : > { %3838 = vmatprep.mubr.msk.bf16.mxu1 %vm715_vm3, %v5117_v56  ;;  %3990 = vmatprep.mubr.msk.bf16.mxu0 %vm715_vm3, %v5119_v31  ;;  %v2531_v7 = vsel %vm764_vm0, %v5633_v6, 0  ;;  %v1245_v46 = vrot.slane %v4412_v25, 5  ;;  %v3414_v18 = vrot.slane %v4413_v32, 9  ;;  %v1244_v43 = vrot.slane %v1242_v28, 4  ;;  %v5638_v21 = vld [vmem:[#allocation20_spill] sm:$0xff]  ;;  %v5645_v42 = vld [vmem:[#allocation9_spill] sm:$0xff] }
  0x7e   : > { %v1860_v33 = vrot.slane %v1859_v13, 4  ;;  %v1870_v39 = vrot.slane %v1869_v24, 4  ;;  %v1657_v35 = vsel %vm764_vm0, %v5058_v3, 0  ;;  %v5636_v3 = vld [vmem:[#allocation14_spill] sm:$0xff]  ;;  %v5279_v24 = vld [vmem:[%s4504_s27 + $0xcc] sm:$0xf] }
  0x7f   : > { %v1243_v55 = vsel %vm4732_vm7, %v3414_v18, %v1242_v28  ;;  %v1246_v12 = vsel %vm4732_vm7, %v1244_v43, %v1245_v46  ;;  %v5639_v13 = vld [vmem:[#allocation22_spill] sm:$0xff]  ;;  %v5282_v9 = vld [vmem:[%s4504_s27 + $0xd0] sm:$0xf]  ;;  %v2743_v10 = vsel %vm764_vm0, %v3555_v60, 0  ;;  %v2502_v14 = vshll.u32 %v5279_v24, 16  ;;  %v5651_v46 = vld [vmem:[#allocation19_spill] sm:$0xff] }
  0x80   : > { %v1865_v15 = vsel %vm4551_vm4, %v1860_v33, %v1864_v11  ;;  %v1875_v27 = vsel %vm4551_vm4, %v1870_v39, %v1874_v58  ;;  %v3431_v59 = vcombine.low %v1243_v55, %v1246_v12  ;;  %v5268_v11 = vcombine.low %v5148_v17, %v5128_v61  ;;  %v5640_v17 = vld [vmem:[#allocation3_spill] sm:$0xff]  ;;  %v5641_v51 = vld [vmem:[#allocation4_spill] sm:$0xff]  ;;  %v5642_v33 = vld [vmem:[#allocation6_spill] sm:$0xff] }
  0x81   : > { %v5190_v16 = vcombine.low %v1865_v15, %v1875_v27  ;;  %v3519_v61 = vcombine.low %v5279_v24, %v5282_v9  ;;  %v5643_v39 = vld [vmem:[#allocation7_spill] sm:$0xff]  ;;  %v5644_v58 = vld [vmem:[#allocation8_spill] sm:$0xff]  ;;  %v5647_v27 = vld [vmem:[#allocation13_spill] sm:$0xff]  ;;  %v2512_v28 = vshrl.u32 %v5282_v9, 16  ;;  %v2504_v32 = vrot.slane %v2502_v14, 5 }
  0x82   : > { %v5646_v15 = vld [vmem:[#allocation11_spill] sm:$0xff]  ;;  %v5648_v6 = vld [vmem:[#allocation16_spill] sm:$0xff]  ;;  %v5650_v25 = vld [vmem:[#allocation2_spill] sm:$0xff]  ;;  %v2729_v34 = vrot.slane %v5282_v9, 5 }
  0x83   : > { %v2514_v43 = vrot.slane %v2512_v28, 4  ;;  %v276_v55 = vld [vmem:[%s4504_s27 + $0xd4] sm:$0x1]  ;;  %v5652_v12 = vld [vmem:[#allocation21_spill] sm:$0xff] }
  0x84   : > { %3839 = vmatmul.mubr.msk.bf16.gmra.mrb[8].mxu1 %vm715_vm3, %v5153_v53  ;;  %3991 = vmatmul.mubr.msk.bf16.gmra.mrb[24].mxu0 %vm715_vm3, %v5155_v44 }
  0x85   : > { %3842 = vmatprep.mubr.msk.bf16.mxu1 %vm715_vm3, %v5159_v8  ;;  %3994 = vmatprep.mubr.msk.bf16.mxu0 %vm715_vm3, %v5165_v1 }
  0x8c   : > { %3843 = vmatmul.mubr.msk.bf16.gmra.mrb[12].mxu1 %vm715_vm3, %v5182_v40  ;;  %3995 = vmatmul.mubr.msk.bf16.gmra.mrb[28].mxu0 %vm715_vm3, %v5184_v19 }
  0x8d   : > { %3846 = vmatprep.mubr.msk.bf16.mxu1 %vm715_vm3, %v5078_v22  ;;  %4000 = vmatprep.mubr.msk.bf16.mxu0 %vm715_vm3, %v5046_v47 }
  0x94   : > { %3847 = vmatmul.mubr.msk.bf16.gmra.mrb[16].mxu1 %vm715_vm3, %v5088_v57  ;;  %4001 = vmatmul.mubr.msk.bf16.vlgmr.msra.gmra.mrb[0].mxu0 %vm715_vm3, %v5072_v23 }
  0x95   : > { %4033 = vmatpush3.bf16.msra.mxu0 %v2531_v7  ;;  %3850 = vmatprep.mubr.msk.bf16.mxu1 %vm715_vm3, %v5097_v5  ;;  %v5649_v7 = vld [vmem:[#allocation18_spill] sm:$0xff] }
  0x96   : > { %4004 = vmatprep.mubr.msk.bf16.mxu0 %vm715_vm3, %v5117_v56  ;;  %4367 = vmatprep.subr.msk.bf16.mxu0 %vm764_vm0, %v3555_v60  ;;  %v2499_v60 = vshrl.u32 %v5279_v24, 16 }
  0x9c   : > { %3851 = vmatmul.mubr.msk.bf16.gmra.mrb[20].mxu1 %vm715_vm3, %v5101_v49  ;;  %4005 = vmatmul.mubr.msk.bf16.gmra.mrb[4].mxu0 %vm715_vm3, %v5153_v53 }
  0x9d   : > { %3854 = vmatprep.mubr.msk.bf16.mxu1 %vm715_vm3, %v5105_v54  ;;  %4008 = vmatprep.mubr.msk.bf16.mxu0 %vm715_vm3, %v5159_v8 }
  0xa4   : > { %3855 = vmatmul.mubr.msk.bf16.gmra.mrb[24].mxu1 %vm715_vm3, %v5109_v36  ;;  %4009 = vmatmul.mubr.msk.bf16.gmra.mrb[8].mxu0 %vm715_vm3, %v5182_v40 }
  0xa5   : > { %3858 = vmatprep.mubr.msk.bf16.mxu1 %vm715_vm3, %v5113_v45  ;;  %4012 = vmatprep.mubr.msk.bf16.mxu0 %vm715_vm3, %v5078_v22 }
  0xac   : > { %3859 = vmatmul.mubr.msk.bf16.gmra.mrb[28].mxu1 %vm715_vm3, %v5123_v29  ;;  %4013 = vmatmul.mubr.msk.bf16.gmra.mrb[12].mxu0 %vm715_vm3, %v5088_v57 }
  0xad   : > { %3864 = vmatprep.mubr.msk.bf16.mxu1 %vm715_vm3, %v3431_v59  ;;  %4016 = vmatprep.mubr.msk.bf16.mxu0 %vm715_vm3, %v5097_v5 }
  0xb4   : > { %3865 = vmatmul.mubr.msk.bf16.vlgmr.msra.gmra.mrb[0].mxu1 %vm715_vm3, %v5634_v48  ;;  %4017 = vmatmul.mubr.msk.bf16.gmra.mrb[16].mxu0 %vm715_vm3, %v5101_v49 }
  0xb5   : > { %3897 = vmatpush3.bf16.msra.mxu1 %v1657_v35  ;;  %3868 = vmatprep.mubr.msk.bf16.mxu1 %vm715_vm3, %v5635_v52  ;;  %v2518_v35 = vshll.u32 %v276_v55, 16 }
  0xb6   : > { %4020 = vmatprep.mubr.msk.bf16.mxu0 %vm715_vm3, %v5105_v54  ;;  %4363 = vmatprep.subr.msk.bf16.mxu1 %vm764_vm0, %v4414_v2 }
  0xbc   : > { %3869 = vmatmul.mubr.msk.bf16.gmra.mrb[4].mxu1 %vm715_vm3, %v5636_v3  ;;  %4021 = vmatmul.mubr.msk.bf16.gmra.mrb[20].mxu0 %vm715_vm3, %v5109_v36 }
  0xbd   : > { %3872 = vmatprep.mubr.msk.bf16.mxu1 %vm715_vm3, %v5637_v4  ;;  %4024 = vmatprep.mubr.msk.bf16.mxu0 %vm715_vm3, %v5113_v45 }
  0xc4   : > { %3873 = vmatmul.mubr.msk.bf16.gmra.mrb[8].mxu1 %vm715_vm3, %v5638_v21  ;;  %4025 = vmatmul.mubr.msk.bf16.gmra.mrb[24].mxu0 %vm715_vm3, %v5123_v29 }
  0xc5   : > { %3876 = vmatprep.mubr.msk.bf16.mxu1 %vm715_vm3, %v5639_v13  ;;  %4028 = vmatprep.mubr.msk.bf16.mxu0 %vm715_vm3, %v5268_v11 }
  0xcc   : > { %3877 = vmatmul.mubr.msk.bf16.gmra.mrb[12].mxu1 %vm715_vm3, %v4983_v37  ;;  %4029 = vmatmul.mubr.msk.bf16.gmra.mrb[28].mxu0 %vm715_vm3, %v3519_v61  ;;  %v2520_v61 = vrot.slane %v2518_v35, 5 }
  0xcd   : > { %3880 = vmatprep.mubr.msk.bf16.mxu1 %vm715_vm3, %v5014_v41  ;;  %4034 = vmatprep.mubr.msk.bf16.mxu0 %vm715_vm3, %v5640_v17 }
  0xd4   : > { %3881 = vmatmul.mubr.msk.bf16.gmra.mrb[16].mxu1 %vm715_vm3, %v5018_v50  ;;  %4035 = vmatmul.mubr.msk.bf16.vlgmr.msra.gmra.mrb[0].mxu0 %vm715_vm3, %v5641_v51 }
  0xd5   : > { %4067 = vmatpush3.bf16.msra.mxu0 %v2743_v10  ;;  %3884 = vmatprep.mubr.msk.bf16.mxu1 %vm715_vm3, %v5040_v20 }
  0xd6   : > { %4038 = vmatprep.mubr.msk.bf16.mxu0 %vm715_vm3, %v5642_v33 }
  0xdc   : > { %3885 = vmatmul.mubr.msk.bf16.gmra.mrb[20].mxu1 %vm715_vm3, %v5051_v0  ;;  %4039 = vmatmul.mubr.msk.bf16.gmra.mrb[4].mxu0 %vm715_vm3, %v5643_v39 }
  0xdd   : > { %3888 = vmatprep.mubr.msk.bf16.mxu1 %vm715_vm3, %v5092_v62  ;;  %4042 = vmatprep.mubr.msk.bf16.mxu0 %vm715_vm3, %v5644_v58 }
  0xe4   : > { %3889 = vmatmul.mubr.msk.bf16.gmra.mrb[24].mxu1 %vm715_vm3, %v5119_v31  ;;  %4043 = vmatmul.mubr.msk.bf16.gmra.mrb[8].mxu0 %vm715_vm3, %v5645_v42 }
  0xe5   : > { %3892 = vmatprep.mubr.msk.bf16.mxu1 %vm715_vm3, %v5155_v44  ;;  %4046 = vmatprep.mubr.msk.bf16.mxu0 %vm715_vm3, %v5646_v15 }
  0xec   : > { %3893 = vmatmul.mubr.msk.bf16.gmra.mrb[28].mxu1 %vm715_vm3, %v5165_v1  ;;  %4047 = vmatmul.mubr.msk.bf16.gmra.mrb[12].mxu0 %vm715_vm3, %v5647_v27 }
  0xed   : > { %3898 = vmatprep.mubr.msk.bf16.mxu1 %vm715_vm3, %v4557_v38  ;;  %4050 = vmatprep.mubr.msk.bf16.mxu0 %vm715_vm3, %v5648_v6  ;;  %v2508_v38 = vshll.u32 %v5282_v9, 16 }
  0xef   : > { %v2510_v18 = vrot.slane %v2508_v38, 5 }
  0xf1   : > { %v2515_v59 = vor.u32 %v2514_v43, %v2510_v18 }
  0xf3   : > { %v2516_v2 = vrot.slane %v2515_v59, 4 }
  0xf4   : > { %3899 = vmatmul.mubr.msk.bf16.vlgmr.msra.gmra.mrb[0].mxu1 %vm715_vm3, %v5046_v47  ;;  %4051 = vmatmul.mubr.msk.bf16.gmra.mrb[16].mxu0 %vm715_vm3, %v5649_v7  ;;  %v2501_v47 = vrot.slane %v2499_v60, 4 }
  0xf5   : > { %4101 = vmatpush3.bf16.msra.mxu1 %v5650_v25  ;;  %3902 = vmatprep.mubr.msk.bf16.mxu1 %vm715_vm3, %v5072_v23 }
  0xf6   : > { %4054 = vmatprep.mubr.msk.bf16.mxu0 %vm715_vm3, %v5651_v46  ;;  %v2505_v23 = vor.u32 %v2504_v32, %v2501_v47 }
  0xf8   : > { %v2506_v48 = vrot.slane %v2505_v23, 4 }
  0xfc   : > { %3903 = vmatmul.mubr.msk.bf16.gmra.mrb[4].mxu1 %vm715_vm3, %v5117_v56  ;;  %4055 = vmatmul.mubr.msk.bf16.gmra.mrb[20].mxu0 %vm715_vm3, %v5652_v12  ;;  %v2511_v56 = vsel %vm4551_vm4, %v2506_v48, %v2510_v18 }
  0xfd   : > { %3906 = vmatprep.mubr.msk.bf16.mxu1 %vm715_vm3, %v5153_v53  ;;  %4058 = vmatprep.mubr.msk.bf16.mxu0 %vm715_vm3, %v4985_v30  ;;  %v2521_v53 = vsel %vm4551_vm4, %v2516_v2, %v2520_v61 }
  0xfe   : > { %v3537_v17 = vcombine.low %v2511_v56, %v2521_v53 }
 0x104   : > { %3907 = vmatmul.mubr.msk.bf16.gmra.mrb[8].mxu1 %vm715_vm3, %v5159_v8  ;;  %4059 = vmatmul.mubr.msk.bf16.gmra.mrb[24].mxu0 %vm715_vm3, %v5012_v63 }
 0x105   : > { %3910 = vmatprep.mubr.msk.bf16.mxu1 %vm715_vm3, %v5182_v40  ;;  %4062 = vmatprep.mubr.msk.bf16.mxu0 %vm715_vm3, %v5190_v16 }
 0x10c   : > { %3911 = vmatmul.mubr.msk.bf16.gmra.mrb[12].mxu1 %vm715_vm3, %v5078_v22  ;;  %4063 = vmatmul.mubr.msk.bf16.gmra.mrb[28].mxu0 %vm715_vm3, %v3537_v17 }
 0x10d   : > { %3914 = vmatprep.mubr.msk.bf16.mxu1 %vm715_vm3, %v5088_v57  ;;  %4068 = vmatprep.mubr.msk.bf16.mxu0 %vm715_vm3, %v5635_v52 }
 0x114   : > { %3915 = vmatmul.mubr.msk.bf16.gmra.mrb[16].mxu1 %vm715_vm3, %v5097_v5  ;;  %4069 = vmatmul.mubr.msk.bf16.vlgmr.msra.gmra.mrb[0].mxu0 %vm715_vm3, %v5636_v3 }
 0x115   : > { %3918 = vmatprep.mubr.msk.bf16.mxu1 %vm715_vm3, %v5101_v49  ;;  %4072 = vmatprep.mubr.msk.bf16.mxu0 %vm715_vm3, %v5637_v4 }
 0x11c   : > { %3919 = vmatmul.mubr.msk.bf16.gmra.mrb[20].mxu1 %vm715_vm3, %v5105_v54  ;;  %4073 = vmatmul.mubr.msk.bf16.gmra.mrb[4].mxu0 %vm715_vm3, %v5638_v21 }
 0x11d   : > { %3922 = vmatprep.mubr.msk.bf16.mxu1 %vm715_vm3, %v5109_v36  ;;  %4076 = vmatprep.mubr.msk.bf16.mxu0 %vm715_vm3, %v5639_v13 }
 0x124   : > { %3923 = vmatmul.mubr.msk.bf16.gmra.mrb[24].mxu1 %vm715_vm3, %v5113_v45  ;;  %4077 = vmatmul.mubr.msk.bf16.gmra.mrb[8].mxu0 %vm715_vm3, %v4983_v37  ;;  %v3554_v37 = vrot.slane %v5279_v24, 9 }
 0x125   : > { %3926 = vmatprep.mubr.msk.bf16.mxu1 %vm715_vm3, %v5123_v29  ;;  %4080 = vmatprep.mubr.msk.bf16.mxu0 %vm715_vm3, %v5014_v41  ;;  %v2731_v41 = vrot.slane %v2729_v34, 4 }
 0x12c   : > { %3927 = vmatmul.mubr.msk.bf16.gmra.mrb[28].mxu1 %vm715_vm3, %v5268_v11  ;;  %4081 = vmatmul.mubr.msk.bf16.gmra.mrb[12].mxu0 %vm715_vm3, %v5018_v50  ;;  %v2732_v50 = vrot.slane %v276_v55, 5 }
 0x12d   : > { %3948 = vmatprep.mubr.msk.bf16.mxu1 %vm715_vm3, %v5647_v27  ;;  %4084 = vmatprep.mubr.msk.bf16.mxu0 %vm715_vm3, %v5040_v20  ;;  %v2730_v20 = vsel %vm4732_vm7, %v3554_v37, %v2729_v34 }
 0x134   : > { %3949 = vmatmul.mubr.msk.bf16.vlgmr.msra.gmra.mrb[16].mxu1 %vm715_vm3, %v5648_v6  ;;  %4085 = vmatmul.mubr.msk.bf16.gmra.mrb[16].mxu0 %vm715_vm3, %v5051_v0  ;;  %v2733_v0 = vsel %vm4732_vm7, %v2731_v41, %v2732_v50 }
 0x135   : > { %3952 = vmatprep.mubr.msk.bf16.mxu1 %vm715_vm3, %v5649_v7  ;;  %4088 = vmatprep.mubr.msk.bf16.mxu0 %vm715_vm3, %v5092_v62  ;;  %v3556_v22 = vcombine.low %v2730_v20, %v2733_v0 }
 0x13c   : > { %3953 = vmatmul.mubr.msk.bf16.gmra.mrb[20].mxu1 %vm715_vm3, %v5651_v46  ;;  %4089 = vmatmul.mubr.msk.bf16.gmra.mrb[20].mxu0 %vm715_vm3, %v5119_v31 }
 0x13d   : > { %3956 = vmatprep.mubr.msk.bf16.mxu1 %vm715_vm3, %v5652_v12  ;;  %4092 = vmatprep.mubr.msk.bf16.mxu0 %vm715_vm3, %v5155_v44 }
 0x144   : > { %3957 = vmatmul.mubr.msk.bf16.gmra.mrb[24].mxu1 %vm715_vm3, %v4985_v30  ;;  %4093 = vmatmul.mubr.msk.bf16.gmra.mrb[24].mxu0 %vm715_vm3, %v5165_v1 }
 0x145   : > { %3960 = vmatprep.mubr.msk.bf16.mxu1 %vm715_vm3, %v5012_v63  ;;  %4096 = vmatprep.mubr.msk.bf16.mxu0 %vm715_vm3, %v5184_v19 }
 0x14c   : > { %3961 = vmatmul.mubr.msk.bf16.gmra.mrb[28].mxu1 %vm715_vm3, %v5190_v16  ;;  %4097 = vmatmul.mubr.msk.bf16.gmra.mrb[28].mxu0 %vm715_vm3, %v3556_v22  ;;  %v5451_v16 = vld [vmem:[%s5574_s2] ss:$0 sm:$0xff] }
 0x1c7   : > { %v3900_v30 = vpop.f32.mrb[0].mxu1 }
 0x1c8   : > { %v1693_v57 = vpop.f32.mrb[1].mxu1 }
 0x1c9   : > { %v3901_v62 = vpop.f32.mrb[2].mxu1 }
 0x1ca   : > { %v1696_v5 = vpop.f32.mrb[3].mxu1 }
 0x1cf   : > { %v3904_v63 = vpop.f32.mrb[4].mxu1 }
 0x1d0   : > { %v1709_v49 = vpop.f32.mrb[5].mxu1 }
 0x1d1   : > { %v3905_v54 = vpop.f32.mrb[6].mxu1 }
 0x1d2   : > { %v1712_v36 = vpop.f32.mrb[7].mxu1 }
 0x1d7   : > { %v5432_v45 = vpop.f32.mrb[8].mxu1 }
 0x1d8   : > { %v5434_v31 = vpop.f32.mrb[9].mxu1 }
 0x1d9   : > { %v5436_v26 = vpop.f32.mrb[10].mxu1 }
 0x1da   : > { %v5438_v29 = vpop.f32.mrb[11].mxu1 }
 0x1df   : > { %v5440_v44 = vpop.f32.mrb[12].mxu1 }
 0x1e0   : > { %v5442_v8 = vpop.f32.mrb[13].mxu1 }
 0x1e1   : > { %v5444_v1 = vpop.f32.mrb[14].mxu1 }
 0x1e2   : > { %v5446_v40 = vpop.f32.mrb[15].mxu1 }
 0x1e7   : > { %v4070_v19 = vpop.f32.mrb[0].mxu0 }
 0x1e8   : > { %v4102_v52 = vadd.f32 %v4070_v19, %v3900_v30  ;;  %v2779_v3 = vpop.f32.mrb[1].mxu0 }
 0x1e9   : > { %v4103_v4 = vadd.f32 %v2779_v3, %v1693_v57  ;;  %v4071_v11 = vpop.f32.mrb[2].mxu0 }
 0x1ea   : > { %v2947_v21 = vadd.f32 %v4102_v52, %v5451_v16  ;;  %v4104_v13 = vadd.f32 %v4071_v11, %v3901_v62  ;;  %v2782_v24 = vpop.f32.mrb[3].mxu0 }
 0x1eb   : > { %v2945_v9 = vadd.f32 %v4103_v4, %v5451_v16  ;;  %v4105_v10 = vadd.f32 %v2782_v24, %v1696_v5 }
 0x1ec   : > { %vm2979_vm8 = vcmp.ge.f32.partialorder %v2947_v21, 0.0  ;;  %v3011_v51 = vmul.f32 0.2, %v2947_v21  ;;  %v2948_v33 = vadd.f32 %v4104_v13, %v5451_v16 }
 0x1ed   : > { %vm2977_vm9 = vcmp.ge.f32.partialorder %v2945_v9, 0.0  ;;  %v3009_v39 = vmul.f32 0.2, %v2945_v9  ;;  %v2946_v58 = vadd.f32 %v4105_v10, %v5451_v16 }
 0x1ee   : > { %v3043_v42 = vsel %vm2979_vm8, %v2947_v21, %v3011_v51  ;;  %vm2980_vm11 = vcmp.ge.f32.partialorder %v2948_v33, 0.0  ;;  %v3012_v15 = vmul.f32 0.2, %v2948_v33 }
 0x1ef   : > { %v3611_v27 = vpack.c.bf16 %v3043_v42, %v3043_v42  ;;  %v3041_v6 = vsel %vm2977_vm9, %v2945_v9, %v3009_v39  ;;  %vm2978_vm12 = vcmp.ge.f32.partialorder %v2946_v58, 0.0  ;;  %v3010_v7 = vmul.f32 0.2, %v2946_v58  ;;  %v4074_v60 = vpop.f32.mrb[4].mxu0 }
 0x1f0   : > { %v3609_v14 = vpack.c.bf16 %v3041_v6, %v3041_v6  ;;  %v3044_v28 = vsel %vm2980_vm11, %v2948_v33, %v3012_v15  ;;  %v4106_v25 = vadd.f32 %v4074_v60, %v3904_v63  ;;  %v2795_v38 = vpop.f32.mrb[5].mxu0 }
 0x1f1   : > { %3204 = vst.msk [vmem:[%s5461_s22 + $0x8] sm:$0xf] %vm3201_vm10, %v3611_v27  ;;  %v3612_v46 = vpack.c.bf16 %v3044_v28, %v3044_v28  ;;  %v3042_v47 = vsel %vm2978_vm12, %v2946_v58, %v3010_v7  ;;  %v4107_v32 = vadd.f32 %v2795_v38, %v1709_v49  ;;  %v4075_v18 = vpop.f32.mrb[6].mxu0 }
 0x1f2   : > { %3202 = vst.msk [vmem:[%s5461_s22] sm:$0xf] %vm3201_vm10, %v3609_v14  ;;  %v3610_v43 = vpack.c.bf16 %v3042_v47, %v3042_v47  ;;  %v2951_v55 = vadd.f32 %v4106_v25, %v5451_v16  ;;  %v4108_v12 = vadd.f32 %v4075_v18, %v3905_v54  ;;  %v2798_v23 = vpop.f32.mrb[7].mxu0 }
 0x1f3   : > { %3205 = vst.msk [vmem:[%s5461_s22 + $0xc] sm:$0xf] %vm3201_vm10, %v3612_v46  ;;  %v2949_v59 = vadd.f32 %v4107_v32, %v5451_v16  ;;  %v4109_v35 = vadd.f32 %v2798_v23, %v1712_v36 }
 0x1f4   : > { %3203 = vst.msk [vmem:[%s5461_s22 + $0x4] sm:$0xf] %vm3201_vm10, %v3610_v43  ;;  %vm2983_vm13 = vcmp.ge.f32.partialorder %v2951_v55, 0.0  ;;  %v3015_v48 = vmul.f32 0.2, %v2951_v55  ;;  %v2952_v2 = vadd.f32 %v4108_v12, %v5451_v16 }
 0x1f5   : > { %vm2981_vm14 = vcmp.ge.f32.partialorder %v2949_v59, 0.0  ;;  %v3013_v61 = vmul.f32 0.2, %v2949_v59  ;;  %v2950_v56 = vadd.f32 %v4109_v35, %v5451_v16 }
 0x1f6   : > { %v3047_v53 = vsel %vm2983_vm13, %v2951_v55, %v3015_v48  ;;  %vm2984_vm15 = vcmp.ge.f32.partialorder %v2952_v2, 0.0  ;;  %v3016_v17 = vmul.f32 0.2, %v2952_v2 }
 0x1f7   : > { %v3615_v34 = vpack.c.bf16 %v3047_v53, %v3047_v53  ;;  %v3045_v37 = vsel %vm2981_vm14, %v2949_v59, %v3013_v61  ;;  %vm2982_vm0 = vcmp.ge.f32.partialorder %v2950_v56, 0.0  ;;  %v3014_v41 = vmul.f32 0.2, %v2950_v56  ;;  %v4078_v50 = vpop.f32.mrb[8].mxu0 }
 0x1f8   : > { %v3613_v20 = vpack.c.bf16 %v3045_v37, %v3045_v37  ;;  %v3048_v0 = vsel %vm2984_vm15, %v2952_v2, %v3016_v17  ;;  %v4110_v22 = vadd.f32 %v4078_v50, %v5432_v45  ;;  %v2811_v30 = vpop.f32.mrb[9].mxu0 }
 0x1f9   : > { %3208 = vst.msk [vmem:[%s5461_s22 + $0x18] sm:$0xf] %vm3201_vm10, %v3615_v34  ;;  %v3616_v57 = vpack.c.bf16 %v3048_v0, %v3048_v0  ;;  %v3046_v62 = vsel %vm2982_vm0, %v2950_v56, %v3014_v41  ;;  %v4111_v5 = vadd.f32 %v2811_v30, %v5434_v31  ;;  %v4079_v63 = vpop.f32.mrb[10].mxu0 }
 0x1fa   : > { %3206 = vst.msk [vmem:[%s5461_s22 + $0x10] sm:$0xf] %vm3201_vm10, %v3613_v20  ;;  %v3614_v49 = vpack.c.bf16 %v3046_v62, %v3046_v62  ;;  %v2955_v54 = vadd.f32 %v4110_v22, %v5451_v16  ;;  %v4112_v36 = vadd.f32 %v4079_v63, %v5436_v26  ;;  %v2814_v19 = vpop.f32.mrb[11].mxu0 }
 0x1fb   : > { %3209 = vst.msk [vmem:[%s5461_s22 + $0x1c] sm:$0xf] %vm3201_vm10, %v3616_v57  ;;  %v2953_v45 = vadd.f32 %v4111_v5, %v5451_v16  ;;  %v4113_v52 = vadd.f32 %v2814_v19, %v5438_v29 }
 0x1fc   : > { %3207 = vst.msk [vmem:[%s5461_s22 + $0x14] sm:$0xf] %vm3201_vm10, %v3614_v49  ;;  %vm2987_vm1 = vcmp.ge.f32.partialorder %v2955_v54, 0.0  ;;  %v3019_v3 = vmul.f32 0.2, %v2955_v54  ;;  %v2956_v31 = vadd.f32 %v4112_v36, %v5451_v16 }
 0x1fd   : > { %vm2985_vm2 = vcmp.ge.f32.partialorder %v2953_v45, 0.0  ;;  %v3017_v4 = vmul.f32 0.2, %v2953_v45  ;;  %v2954_v11 = vadd.f32 %v4113_v52, %v5451_v16 }
 0x1fe   : > { %v3051_v21 = vsel %vm2987_vm1, %v2955_v54, %v3019_v3  ;;  %vm2988_vm3 = vcmp.ge.f32.partialorder %v2956_v31, 0.0  ;;  %v3020_v26 = vmul.f32 0.2, %v2956_v31 }
 0x1ff   : > { %v3619_v13 = vpack.c.bf16 %v3051_v21, %v3051_v21  ;;  %v3049_v24 = vsel %vm2985_vm2, %v2953_v45, %v3017_v4  ;;  %vm2986_vm4 = vcmp.ge.f32.partialorder %v2954_v11, 0.0  ;;  %v3018_v9 = vmul.f32 0.2, %v2954_v11  ;;  %v4082_v29 = vpop.f32.mrb[12].mxu0 }
 0x200   : > { %v3617_v10 = vpack.c.bf16 %v3049_v24, %v3049_v24  ;;  %v3052_v51 = vsel %vm2988_vm3, %v2956_v31, %v3020_v26  ;;  %v4114_v33 = vadd.f32 %v4082_v29, %v5440_v44  ;;  %v2827_v39 = vpop.f32.mrb[13].mxu0 }
 0x201   : > { %3212 = vst.msk [vmem:[%s5461_s22 + $0x28] sm:$0xf] %vm3201_vm10, %v3619_v13  ;;  %v3620_v58 = vpack.c.bf16 %v3052_v51, %v3052_v51  ;;  %v3050_v42 = vsel %vm2986_vm4, %v2954_v11, %v3018_v9  ;;  %v4115_v15 = vadd.f32 %v2827_v39, %v5442_v8  ;;  %v4083_v27 = vpop.f32.mrb[14].mxu0 }
 0x202   : > { %3210 = vst.msk [vmem:[%s5461_s22 + $0x20] sm:$0xf] %vm3201_vm10, %v3617_v10  ;;  %v3618_v6 = vpack.c.bf16 %v3050_v42, %v3050_v42  ;;  %v2959_v7 = vadd.f32 %v4114_v33, %v5451_v16  ;;  %v4116_v60 = vadd.f32 %v4083_v27, %v5444_v1  ;;  %v2830_v14 = vpop.f32.mrb[15].mxu0 }
 0x203   : > { %3213 = vst.msk [vmem:[%s5461_s22 + $0x2c] sm:$0xf] %vm3201_vm10, %v3620_v58  ;;  %v2957_v44 = vadd.f32 %v4115_v15, %v5451_v16  ;;  %v4117_v28 = vadd.f32 %v2830_v14, %v5446_v40 }
 0x204   : > { %3211 = vst.msk [vmem:[%s5461_s22 + $0x24] sm:$0xf] %vm3201_vm10, %v3618_v6  ;;  %vm2991_vm5 = vcmp.ge.f32.partialorder %v2959_v7, 0.0  ;;  %v3023_v25 = vmul.f32 0.2, %v2959_v7  ;;  %v2960_v8 = vadd.f32 %v4116_v60, %v5451_v16 }
 0x205   : > { %vm2989_vm6 = vcmp.ge.f32.partialorder %v2957_v44, 0.0  ;;  %v3021_v38 = vmul.f32 0.2, %v2957_v44  ;;  %v2958_v46 = vadd.f32 %v4117_v28, %v5451_v16 }
 0x206   : > { %v3055_v47 = vsel %vm2991_vm5, %v2959_v7, %v3023_v25  ;;  %vm2992_vm7 = vcmp.ge.f32.partialorder %v2960_v8, 0.0  ;;  %v3024_v1 = vmul.f32 0.2, %v2960_v8 }
 0x207   : > { %v3623_v32 = vpack.c.bf16 %v3055_v47, %v3055_v47  ;;  %v3053_v18 = vsel %vm2989_vm6, %v2957_v44, %v3021_v38  ;;  %vm2990_vm8 = vcmp.ge.f32.partialorder %v2958_v46, 0.0  ;;  %v3022_v43 = vmul.f32 0.2, %v2958_v46  ;;  %v3950_v40 = vpop.f32.mrb[16].mxu1  ;;  %v4086_v55 = vpop.f32.mrb[16].mxu0 }
 0x208   : > { %v3621_v12 = vpack.c.bf16 %v3053_v18, %v3053_v18  ;;  %v3056_v23 = vsel %vm2992_vm7, %v2960_v8, %v3024_v1  ;;  %v4118_v59 = vadd.f32 %v4086_v55, %v3950_v40  ;;  %v1985_v35 = vpop.f32.mrb[17].mxu1  ;;  %v2843_v48 = vpop.f32.mrb[17].mxu0 }
 0x209   : > { %3216 = vst.msk [vmem:[%s5461_s22 + $0x38] sm:$0xf] %vm3201_vm10, %v3623_v32  ;;  %v3624_v2 = vpack.c.bf16 %v3056_v23, %v3056_v23  ;;  %v3054_v61 = vsel %vm2990_vm8, %v2958_v46, %v3022_v43  ;;  %v4119_v56 = vadd.f32 %v2843_v48, %v1985_v35  ;;  %v3951_v53 = vpop.f32.mrb[18].mxu1  ;;  %v4087_v17 = vpop.f32.mrb[18].mxu0 }
 0x20a   : > { %3214 = vst.msk [vmem:[%s5461_s22 + $0x30] sm:$0xf] %vm3201_vm10, %v3621_v12  ;;  %v3622_v34 = vpack.c.bf16 %v3054_v61, %v3054_v61  ;;  %v2963_v37 = vadd.f32 %v4118_v59, %v5451_v16  ;;  %v4120_v41 = vadd.f32 %v4087_v17, %v3951_v53  ;;  %v1988_v50 = vpop.f32.mrb[19].mxu1  ;;  %v2846_v20 = vpop.f32.mrb[19].mxu0 }
 0x20b   : > { %3217 = vst.msk [vmem:[%s5461_s22 + $0x3c] sm:$0xf] %vm3201_vm10, %v3624_v2  ;;  %v2961_v0 = vadd.f32 %v4119_v56, %v5451_v16  ;;  %v4121_v22 = vadd.f32 %v2846_v20, %v1988_v50 }
 0x20c   : > { %3215 = vst.msk [vmem:[%s5461_s22 + $0x34] sm:$0xf] %vm3201_vm10, %v3622_v34  ;;  %vm2995_vm9 = vcmp.ge.f32.partialorder %v2963_v37, 0.0  ;;  %v3027_v30 = vmul.f32 0.2, %v2963_v37  ;;  %v2964_v57 = vadd.f32 %v4120_v41, %v5451_v16 }
 0x20d   : > { %vm2993_vm11 = vcmp.ge.f32.partialorder %v2961_v0, 0.0  ;;  %v3025_v62 = vmul.f32 0.2, %v2961_v0  ;;  %v2962_v5 = vadd.f32 %v4121_v22, %v5451_v16 }
 0x20e   : > { %v3059_v63 = vsel %vm2995_vm9, %v2963_v37, %v3027_v30  ;;  %vm2996_vm12 = vcmp.ge.f32.partialorder %v2964_v57, 0.0  ;;  %v3028_v49 = vmul.f32 0.2, %v2964_v57 }
 0x20f   : > { %v3627_v54 = vpack.c.bf16 %v3059_v63, %v3059_v63  ;;  %v3057_v36 = vsel %vm2993_vm11, %v2961_v0, %v3025_v62  ;;  %vm2994_vm13 = vcmp.ge.f32.partialorder %v2962_v5, 0.0  ;;  %v3026_v19 = vmul.f32 0.2, %v2962_v5  ;;  %v3954_v45 = vpop.f32.mrb[20].mxu1  ;;  %v4090_v52 = vpop.f32.mrb[20].mxu0 }
 0x210   : > { %v3625_v3 = vpack.c.bf16 %v3057_v36, %v3057_v36  ;;  %v3060_v31 = vsel %vm2996_vm12, %v2964_v57, %v3028_v49  ;;  %v4122_v4 = vadd.f32 %v4090_v52, %v3954_v45  ;;  %v2001_v11 = vpop.f32.mrb[21].mxu1  ;;  %v2859_v21 = vpop.f32.mrb[21].mxu0 }
 0x211   : > { %3220 = vst.msk [vmem:[%s5461_s22 + $0x48] sm:$0xf] %vm3201_vm10, %v3627_v54  ;;  %v3628_v26 = vpack.c.bf16 %v3060_v31, %v3060_v31  ;;  %v3058_v13 = vsel %vm2994_vm13, %v2962_v5, %v3026_v19  ;;  %v4123_v24 = vadd.f32 %v2859_v21, %v2001_v11  ;;  %v3955_v9 = vpop.f32.mrb[22].mxu1  ;;  %v4091_v29 = vpop.f32.mrb[22].mxu0 }
 0x212   : > { %3218 = vst.msk [vmem:[%s5461_s22 + $0x40] sm:$0xf] %vm3201_vm10, %v3625_v3  ;;  %v3626_v10 = vpack.c.bf16 %v3058_v13, %v3058_v13  ;;  %v2967_v51 = vadd.f32 %v4122_v4, %v5451_v16  ;;  %v4124_v33 = vadd.f32 %v4091_v29, %v3955_v9  ;;  %v2004_v39 = vpop.f32.mrb[23].mxu1  ;;  %v2862_v58 = vpop.f32.mrb[23].mxu0 }
 0x213   : > { %3221 = vst.msk [vmem:[%s5461_s22 + $0x4c] sm:$0xf] %vm3201_vm10, %v3628_v26  ;;  %v2965_v42 = vadd.f32 %v4123_v24, %v5451_v16  ;;  %v4125_v15 = vadd.f32 %v2862_v58, %v2004_v39 }
 0x214   : > { %3219 = vst.msk [vmem:[%s5461_s22 + $0x44] sm:$0xf] %vm3201_vm10, %v3626_v10  ;;  %vm2999_vm14 = vcmp.ge.f32.partialorder %v2967_v51, 0.0  ;;  %v3031_v27 = vmul.f32 0.2, %v2967_v51  ;;  %v2968_v6 = vadd.f32 %v4124_v33, %v5451_v16 }
 0x215   : > { %vm2997_vm15 = vcmp.ge.f32.partialorder %v2965_v42, 0.0  ;;  %v3029_v7 = vmul.f32 0.2, %v2965_v42  ;;  %v2966_v60 = vadd.f32 %v4125_v15, %v5451_v16 }
 0x216   : > { %v3063_v14 = vsel %vm2999_vm14, %v2967_v51, %v3031_v27  ;;  %vm3000_vm0 = vcmp.ge.f32.partialorder %v2968_v6, 0.0  ;;  %v3032_v44 = vmul.f32 0.2, %v2968_v6 }
 0x217   : > { %v3631_v28 = vpack.c.bf16 %v3063_v14, %v3063_v14  ;;  %v3061_v25 = vsel %vm2997_vm15, %v2965_v42, %v3029_v7  ;;  %vm2998_vm1 = vcmp.ge.f32.partialorder %v2966_v60, 0.0  ;;  %v3030_v8 = vmul.f32 0.2, %v2966_v60  ;;  %v3958_v38 = vpop.f32.mrb[24].mxu1  ;;  %v4094_v46 = vpop.f32.mrb[24].mxu0 }
 0x218   : > { %v3629_v47 = vpack.c.bf16 %v3061_v25, %v3061_v25  ;;  %v3064_v1 = vsel %vm3000_vm0, %v2968_v6, %v3032_v44  ;;  %v4126_v32 = vadd.f32 %v4094_v46, %v3958_v38  ;;  %v2017_v18 = vpop.f32.mrb[25].mxu1  ;;  %v2875_v43 = vpop.f32.mrb[25].mxu0 }
 0x219   : > { %3224 = vst.msk [vmem:[%s5461_s22 + $0x58] sm:$0xf] %vm3201_vm10, %v3631_v28  ;;  %v3632_v40 = vpack.c.bf16 %v3064_v1, %v3064_v1  ;;  %v3062_v55 = vsel %vm2998_vm1, %v2966_v60, %v3030_v8  ;;  %v4127_v12 = vadd.f32 %v2875_v43, %v2017_v18  ;;  %v3959_v23 = vpop.f32.mrb[26].mxu1  ;;  %v4095_v59 = vpop.f32.mrb[26].mxu0 }
 0x21a   : > { %3222 = vst.msk [vmem:[%s5461_s22 + $0x50] sm:$0xf] %vm3201_vm10, %v3629_v47  ;;  %v3630_v35 = vpack.c.bf16 %v3062_v55, %v3062_v55  ;;  %v2971_v48 = vadd.f32 %v4126_v32, %v5451_v16  ;;  %v4128_v2 = vadd.f32 %v4095_v59, %v3959_v23  ;;  %v2020_v61 = vpop.f32.mrb[27].mxu1  ;;  %v2878_v56 = vpop.f32.mrb[27].mxu0 }
 0x21b   : > { %3225 = vst.msk [vmem:[%s5461_s22 + $0x5c] sm:$0xf] %vm3201_vm10, %v3632_v40  ;;  %v2969_v53 = vadd.f32 %v4127_v12, %v5451_v16  ;;  %v4129_v17 = vadd.f32 %v2878_v56, %v2020_v61 }
 0x21c   : > { %3223 = vst.msk [vmem:[%s5461_s22 + $0x54] sm:$0xf] %vm3201_vm10, %v3630_v35  ;;  %vm3003_vm2 = vcmp.ge.f32.partialorder %v2971_v48, 0.0  ;;  %v3035_v34 = vmul.f32 0.2, %v2971_v48  ;;  %v2972_v37 = vadd.f32 %v4128_v2, %v5451_v16 }
 0x21d   : > { %vm3001_vm3 = vcmp.ge.f32.partialorder %v2969_v53, 0.0  ;;  %v3033_v41 = vmul.f32 0.2, %v2969_v53  ;;  %v2970_v50 = vadd.f32 %v4129_v17, %v5451_v16 }
 0x21e   : > { %v3067_v20 = vsel %vm3003_vm2, %v2971_v48, %v3035_v34  ;;  %vm3004_vm4 = vcmp.ge.f32.partialorder %v2972_v37, 0.0  ;;  %v3036_v0 = vmul.f32 0.2, %v2972_v37 }
 0x21f   : > { %v3635_v22 = vpack.c.bf16 %v3067_v20, %v3067_v20  ;;  %v3065_v30 = vsel %vm3001_vm3, %v2969_v53, %v3033_v41  ;;  %vm3002_vm5 = vcmp.ge.f32.partialorder %v2970_v50, 0.0  ;;  %v3034_v57 = vmul.f32 0.2, %v2970_v50  ;;  %v3962_v62 = vpop.f32.mrb[28].mxu1  ;;  %v4098_v5 = vpop.f32.mrb[28].mxu0 }
 0x220   : > { %v3633_v63 = vpack.c.bf16 %v3065_v30, %v3065_v30  ;;  %v3068_v49 = vsel %vm3004_vm4, %v2972_v37, %v3036_v0  ;;  %v4130_v54 = vadd.f32 %v4098_v5, %v3962_v62  ;;  %v2033_v36 = vpop.f32.mrb[29].mxu1  ;;  %v2891_v19 = vpop.f32.mrb[29].mxu0 }
 0x221   : > { %3228 = vst.msk [vmem:[%s5461_s22 + $0x68] sm:$0xf] %vm3201_vm10, %v3635_v22  ;;  %v3636_v45 = vpack.c.bf16 %v3068_v49, %v3068_v49  ;;  %v3066_v52 = vsel %vm3002_vm5, %v2970_v50, %v3034_v57  ;;  %v4131_v3 = vadd.f32 %v2891_v19, %v2033_v36  ;;  %v3963_v31 = vpop.f32.mrb[30].mxu1  ;;  %v4099_v4 = vpop.f32.mrb[30].mxu0 }
 0x222   : > { %3226 = vst.msk [vmem:[%s5461_s22 + $0x60] sm:$0xf] %vm3201_vm10, %v3633_v63  ;;  %v3634_v11 = vpack.c.bf16 %v3066_v52, %v3066_v52  ;;  %v2975_v21 = vadd.f32 %v4130_v54, %v5451_v16  ;;  %v4132_v26 = vadd.f32 %v4099_v4, %v3963_v31  ;;  %v2036_v13 = vpop.f32.mrb[31].mxu1  ;;  %v2894_v24 = vpop.f32.mrb[31].mxu0 }
 0x223   : > { %3229 = vst.msk [vmem:[%s5461_s22 + $0x6c] sm:$0xf] %vm3201_vm10, %v3636_v45  ;;  %v2973_v9 = vadd.f32 %v4131_v3, %v5451_v16  ;;  %v4133_v29 = vadd.f32 %v2894_v24, %v2036_v13 }
 0x224   : > { %3227 = vst.msk [vmem:[%s5461_s22 + $0x64] sm:$0xf] %vm3201_vm10, %v3634_v11  ;;  %vm3007_vm6 = vcmp.ge.f32.partialorder %v2975_v21, 0.0  ;;  %v3039_v10 = vmul.f32 0.2, %v2975_v21  ;;  %v2976_v51 = vadd.f32 %v4132_v26, %v5451_v16 }
 0x225   : > { %vm3005_vm7 = vcmp.ge.f32.partialorder %v2973_v9, 0.0  ;;  %v3037_v33 = vmul.f32 0.2, %v2973_v9  ;;  %v2974_v39 = vadd.f32 %v4133_v29, %v5451_v16 }
 0x226   : > { %v3071_v58 = vsel %vm3007_vm6, %v2975_v21, %v3039_v10  ;;  %vm3008_vm8 = vcmp.ge.f32.partialorder %v2976_v51, 0.0  ;;  %v3040_v42 = vmul.f32 0.2, %v2976_v51 }
 0x227   : > { %v3639_v15 = vpack.c.bf16 %v3071_v58, %v3071_v58  ;;  %v3069_v27 = vsel %vm3005_vm7, %v2973_v9, %v3037_v33  ;;  %vm3006_vm9 = vcmp.ge.f32.partialorder %v2974_v39, 0.0  ;;  %v3038_v6 = vmul.f32 0.2, %v2974_v39 }
 0x228   : > { %v3637_v7 = vpack.c.bf16 %v3069_v27, %v3069_v27  ;;  %v3072_v60 = vsel %vm3008_vm8, %v2976_v51, %v3040_v42 }
 0x229   : > { %3232 = vst.msk [vmem:[%s5461_s22 + $0x78] sm:$0xf] %vm3201_vm10, %v3639_v15  ;;  %v3640_v14 = vpack.c.bf16 %v3072_v60, %v3072_v60  ;;  %v3070_v44 = vsel %vm3006_vm9, %v2974_v39, %v3038_v6 }
 0x22a   : > { %3230 = vst.msk [vmem:[%s5461_s22 + $0x70] sm:$0xf] %vm3201_vm10, %v3637_v7  ;;  %v3638_v28 = vpack.c.bf16 %v3070_v44, %v3070_v44 }
 0x22b   : > { %3233 = vst.msk [vmem:[%s5461_s22 + $0x7c] sm:$0xf] %vm3201_vm10, %v3640_v14 }
 0x22c   : > { %3231 = vst.msk [vmem:[%s5461_s22 + $0x74] sm:$0xf] %vm3201_vm10, %v3638_v28 }
 0x22d PF: > { %s13_s14 = sadd.s32 1, %s4437_s14   ;;  %s5653_s12 = smov %s4433_s13 }
 0x22e   : > { %p10_p5 = scmp.ge.s32.totalorder %s13_s14, 4   ;;  %s5654_s13 = smov %s5656_s15 }
 0x230   :  { %12 = sbr.rel (!%p10_p5) target bundleno = 2 (0x2), region = 76 }

</bundles_post_ra>
